<compile_context>
chip_gen: v6e
topology: v6e:2x2x1
jax: 0.10.0
libtpu: 0.0.40
codegen_flags: <defaults>
</compile_context>

<pallas_src>
import math
from functools import partial

import jax
import jax.numpy as jnp
from jax.experimental import pallas as pl
from jax.experimental.pallas import tpu as pltpu


def _round_up(v, m):
    return (v + m - 1) // m * m


def _pad2d(x, rows, cols):
    return jnp.pad(x, ((0, rows - x.shape[0]), (0, cols - x.shape[1])))


def _choose_tiles(n, block_m=1024, block_k=1024):
    """Pick (block_m, block_k, padded_N) consistently for preprocess + forward."""
    n128 = _round_up(n, 128)
    bm = min(block_m, n128)
    bk = min(block_k, n128)
    # v7x megacore: keep >= 2 row tiles so the "parallel" i axis can be split
    # across the two TensorCores (harmless on single-TC v5e/v6e).
    if n128 // bm < 2 and bm > 128:
        bm = max(128, (bm // 2) // 128 * 128)
    np_ = _round_up(n, math.lcm(bm, bk))
    return bm, bk, np_


# ---------------------------------------------------------------------------
# Kernel 1: per-node projections  s = x @ W_self + b (f32),  z = x @ W_neigh (bf16)
# ---------------------------------------------------------------------------
def _proj_kernel(x_ref, ws_ref, wn_ref, b_ref, s_ref, z_ref):
    x = x_ref[...]
    s_ref[...] = (jnp.dot(x, ws_ref[...], preferred_element_type=jnp.float32)
                  + b_ref[...]).astype(s_ref.dtype)
    z_ref[...] = jnp.dot(x, wn_ref[...],
                         preferred_element_type=jnp.float32).astype(z_ref.dtype)


def sage_project(x, w_self, w_neigh, bias, *, block_m):
    """x [Np, Fin_p] bf16, w_* [Fin_p, Fout_p] bf16, bias [1, Fout_p] f32.
    Returns (s [Np, Fout_p] f32, z [Np, Fout_p] bf16)."""
    n, fin = x.shape
    fout = w_self.shape[1]
    assert n % block_m == 0, (n, block_m)

    footprint = 2 * (block_m * fin * 2          # x tile (bf16)
                     + 2 * fin * fout * 2       # two weights (bf16, resident)
                     + fout * 4                 # bias (f32)
                     + block_m * fout * 4       # s output (f32)
                     + block_m * fout * 2)      # z output (bf16)
    vmem_limit = min(96 << 20, 2 * footprint + (16 << 20))

    return pl.pallas_call(
        _proj_kernel,
        out_shape=(jax.ShapeDtypeStruct((n, fout), jnp.float32),
                   jax.ShapeDtypeStruct((n, fout), x.dtype)),
        grid_spec=pltpu.PrefetchScalarGridSpec(
            num_scalar_prefetch=0,
            grid=(n // block_m,),
            in_specs=[
                pl.BlockSpec((block_m, fin), lambda i: (i, 0)),   # x row tile
                pl.BlockSpec((fin, fout), lambda i: (0, 0)),      # W_self (resident)
                pl.BlockSpec((fin, fout), lambda i: (0, 0)),      # W_neigh (resident)
                pl.BlockSpec((1, fout), lambda i: (0, 0)),        # bias (resident)
            ],
            out_specs=[
                pl.BlockSpec((block_m, fout), lambda i: (i, 0)),  # s
                pl.BlockSpec((block_m, fout), lambda i: (i, 0)),  # z
            ],
        ),
        compiler_params=pltpu.CompilerParams(
            dimension_semantics=("parallel",),
            vmem_limit_bytes=vmem_limit,
        ),
    )(x, w_self, w_neigh, bias)


# ---------------------------------------------------------------------------
# Kernel 2: neighbor aggregation  out = relu(inv_deg * (A @ z) + s)
# ---------------------------------------------------------------------------
def _agg_kernel(a_ref, z_ref, s_ref, invdeg_ref, o_ref, acc_ref, *, apply_relu):
    """a [TM, TK] int8 binary adjacency, z [TK, Fout_p] bf16 projected features,
    s [TM, Fout_p] f32 self-term+bias, invdeg [TM, 1] f32, acc [TM, Fout_p] f32."""
    k = pl.program_id(1)

    @pl.when(k == 0)
    def _():
        acc_ref[...] = jnp.zeros_like(acc_ref)

    # int8 {0,1} -> bf16 for the MXU (via f32 widen; VPU has slack, DMA-bound).
    a = a_ref[...].astype(jnp.float32).astype(jnp.bfloat16)
    acc_ref[...] += jnp.dot(a, z_ref[...], preferred_element_type=jnp.float32)

    @pl.when(k == pl.num_programs(1) - 1)
    def _():
        out = acc_ref[...] * invdeg_ref[...] + s_ref[...]
        if apply_relu:
            out = jnp.maximum(out, 0.0)
        o_ref[...] = out.astype(o_ref.dtype)


def sage_aggregate(adj_i8, z, s, inv_deg, *, apply_relu, out_dtype,
                   block_m, block_k):
    """adj_i8 [Np, Np] int8, z [Np, Fout_p] bf16, s [Np, Fout_p] f32,
    inv_deg [Np, 1] f32.  Returns out [Np, Fout_p] out_dtype."""
    n = adj_i8.shape[0]
    fout = z.shape[1]
    assert n % block_m == 0 and n % block_k == 0, (n, block_m, block_k)
    out_bytes = jnp.dtype(out_dtype).itemsize

    footprint = (2 * (block_m * block_k              # A tile (int8)
                      + block_k * fout * 2           # z tile (bf16)
                      + block_m * fout * 4           # s tile (f32)
                      + block_m * 4                  # inv_deg (f32)
                      + block_m * fout * out_bytes)  # output tile
                 + block_m * fout * 4)               # f32 acc scratch
    vmem_limit = min(96 << 20, 2 * footprint + (16 << 20))

    kernel = partial(_agg_kernel, apply_relu=apply_relu)
    return pl.pallas_call(
        kernel,
        out_shape=jax.ShapeDtypeStruct((n, fout), out_dtype),
        grid_spec=pltpu.PrefetchScalarGridSpec(
            num_scalar_prefetch=0,
            grid=(n // block_m, n // block_k),
            in_specs=[
                pl.BlockSpec((block_m, block_k), lambda i, k: (i, k)),  # A tile
                pl.BlockSpec((block_k, fout), lambda i, k: (k, 0)),     # z contraction tile
                pl.BlockSpec((block_m, fout), lambda i, k: (i, 0)),     # s row tile (1 fetch / i)
                pl.BlockSpec((block_m, 1), lambda i, k: (i, 0)),        # inv_deg row tile
            ],
            out_specs=pl.BlockSpec((block_m, fout), lambda i, k: (i, 0)),
            scratch_shapes=[pltpu.VMEM((block_m, fout), jnp.float32)],
        ),
        compiler_params=pltpu.CompilerParams(
            dimension_semantics=("parallel", "arbitrary"),
            vmem_limit_bytes=vmem_limit,
        ),
    )(adj_i8, z, s, inv_deg)


# ---------------------------------------------------------------------------
# Graph preprocessing (one-time, hoisted out of the per-forward path)
# ---------------------------------------------------------------------------
def preprocess_graph(adj, *, block_m=1024, block_k=1024):
    """Binary adjacency -> padded int8; per-destination-row 1/deg -> padded f32."""
    n = adj.shape[0]
    _, _, np_ = _choose_tiles(n, block_m, block_k)
    adj_b = (adj != 0)
    deg = jnp.sum(adj_b, axis=1, keepdims=True).astype(jnp.float32)
    inv_deg = jnp.where(deg > 0, 1.0 / jnp.maximum(deg, 1.0), 0.0)
    adj_i8 = _pad2d(adj_b.astype(jnp.int8), np_, np_)
    inv_deg = jnp.pad(inv_deg, ((0, np_ - n), (0, 0)))
    return adj_i8, inv_deg


# ---------------------------------------------------------------------------
# Full forward
# ---------------------------------------------------------------------------
def graphsage_forward(adj_i8, inv_deg, features, params, *, block_m=1024,
                      block_k=1024, compute_dtype=jnp.bfloat16):
    """params: list of (w_self [Fin,Fout], w_neigh [Fin,Fout], bias [1,Fout]).
    ReLU on all but the last layer.  adj_i8 / inv_deg come from preprocess_graph."""
    n = features.shape[0]
    n_classes = params[-1][0].shape[1]
    bm, bk, np_ = _choose_tiles(n, block_m, block_k)
    assert adj_i8.shape == (np_, np_), (adj_i8.shape, np_)
    assert inv_deg.shape == (np_, 1), inv_deg.shape

    h = _pad2d(features, np_, _round_up(features.shape[1], 128)).astype(compute_dtype)

    n_layers = len(params)
    for li, (w_self, w_neigh, bias) in enumerate(params):
        fin, fout = w_self.shape
        fin_p, fout_p = _round_up(fin, 128), _round_up(fout, 128)
        ws = _pad2d(w_self, fin_p, fout_p).astype(compute_dtype)
        wn = _pad2d(w_neigh, fin_p, fout_p).astype(compute_dtype)
        b = _pad2d(bias, 1, fout_p).astype(jnp.float32)
        last = li == n_layers - 1

        s, z = sage_project(h, ws, wn, b, block_m=bm)
        h = sage_aggregate(
            adj_i8, z, s, inv_deg,
            apply_relu=not last,
            out_dtype=jnp.float32 if last else compute_dtype,
            block_m=bm, block_k=bk,
        )
    return h[:n, :n_classes]   # strip node / class padding


def init_linear(key, fin, fout):
    """Deterministic Xavier-uniform-ish init, nn.Linear shapes as [Fin, Fout]."""
    kw, kb = jax.random.split(key)
    limit = (6.0 / (fin + fout)) ** 0.5
    w = jax.random.uniform(kw, (fin, fout), jnp.float32, -limit, limit)
    b = jax.random.uniform(kb, (1, fout), jnp.float32, -limit, limit)
    return w, b


def _reference_forward(a_norm, features, params):
    """Pure-jnp f32 dense reference mirroring the module semantics."""
    h = features
    for li, (w_self, w_neigh, bias) in enumerate(params):
        h_neigh = a_norm @ h
        h = h @ w_self + h_neigh @ w_neigh + bias
        if li < len(params) - 1:
            h = jnp.maximum(h, 0.0)
    return h


if __name__ == "__main__":
    N = 512           # number of graph nodes (exercises a (2, 1) aggregation grid)
    IN_FEATS = 16
    SIZE_HIDDEN = 32
    N_CLASSES = 8
    N_LAYERS = 2      # module builds n_layers + 1 SAGEConv layers (here: 3)

    key = jax.random.PRNGKey(0)
    k_adj, k_feat, k_params = jax.random.split(key, 3)

    # Random graph: dense adjacency with self-loops so every node has degree >= 1.
    adj = (jax.random.uniform(k_adj, (N, N)) < 0.05).astype(jnp.float32)
    adj = jnp.maximum(adj, jnp.eye(N, dtype=jnp.float32))  # add self-loops
    features = jax.random.normal(k_feat, (N, IN_FEATS), jnp.float32)

    # Parameters for: in->hidden, (n_layers-1) x hidden->hidden, hidden->classes.
    layer_dims = [(IN_FEATS, SIZE_HIDDEN)]
    layer_dims += [(SIZE_HIDDEN, SIZE_HIDDEN)] * (N_LAYERS - 1)
    layer_dims += [(SIZE_HIDDEN, N_CLASSES)]

    params = []
    keys = jax.random.split(k_params, len(layer_dims) * 2)
    for li, (fin, fout) in enumerate(layer_dims):
        w_self, bias = init_linear(keys[2 * li], fin, fout)
        w_neigh, _ = init_linear(keys[2 * li + 1], fin, fout)
        params.append((w_self, w_neigh, bias))

    # One-time graph prep (binary int8 adjacency + f32 inv-degree), hoisted out of
    # the per-forward path.
    adj_i8, inv_deg = preprocess_graph(adj)

    fwd = jax.jit(graphsage_forward)
    out = jax.block_until_ready(fwd(adj_i8, inv_deg, features, params))

    assert out.shape == (N, N_CLASSES), out.shape
    assert out.dtype == jnp.float32
    assert bool(jnp.all(jnp.isfinite(out)))

    # Loose check vs f32 dense reference (kernel uses bf16 matmuls, f32 accumulation).
    deg = jnp.sum(adj, axis=1, keepdims=True)
    a_norm = adj / jnp.maximum(deg, 1.0)
    ref = _reference_forward(a_norm, features, params)
    assert bool(jnp.allclose(out, ref, rtol=0.1, atol=0.2)), float(jnp.max(jnp.abs(out - ref)))

    print("KERNEL_OK")
</pallas_src>

<mosaic_0001>
module attributes {stable_mosaic.version = 11 : i64} {
  func.func @_agg_kernel(%arg0: i32, %arg1: i32, %arg2: memref<256x512xi8, #tpu.memory_space<vmem>>, %arg3: memref<512x128xbf16, #tpu.memory_space<vmem>>, %arg4: memref<256x128xf32, #tpu.memory_space<vmem>>, %arg5: memref<256x1xf32, #tpu.memory_space<vmem>>, %arg6: memref<256x128xf32, #tpu.memory_space<vmem>>, %arg7: memref<256x128xf32, #tpu.memory_space<vmem>>) attributes {dimension_semantics = [#tpu.dimension_semantics<parallel>, #tpu.dimension_semantics<arbitrary>], iteration_bounds = array<i64: 2, 1>, scalar_prefetch = 0 : i64, scratch_operands = 1 : i64, tpu.core_type = #tpu.core_type<tc>, window_params = [{transform_indices = @transform_0, window_bounds = array<i64: 256, 512>}, {transform_indices = @transform_1, window_bounds = array<i64: 512, 128>}, {transform_indices = @transform_2, window_bounds = array<i64: 256, 128>}, {transform_indices = @transform_3, window_bounds = array<i64: 256, 1>}, {transform_indices = @transform_4, window_bounds = array<i64: 256, 128>}]} {
    %c0_i32 = arith.constant 0 : i32
    %0 = arith.cmpi eq, %arg1, %c0_i32 : i32
    %1 = arith.extui %0 : i1 to i32
    %c0_i32_0 = arith.constant 0 : i32
    %2 = arith.cmpi ne, %1, %c0_i32_0 : i32
    scf.if %2 {
      %cst_10 = arith.constant 0.000000e+00 : f32
      %14 = vector.broadcast %cst_10 : f32 to vector<256x128xf32>
      %c0_11 = arith.constant 0 : index
      %c0_12 = arith.constant 0 : index
      %15 = vector.load %arg7[%c0_11, %c0_12] : memref<256x128xf32, #tpu.memory_space<vmem>>, vector<256x128xf32>
      tpu.vector_store %arg7[%c0_11, %c0_12], %14 {strides = array<i32>} : memref<256x128xf32, #tpu.memory_space<vmem>>, vector<256x128xf32>,
    } else {
    }
    %c0 = arith.constant 0 : index
    %c0_1 = arith.constant 0 : index
    %3 = vector.load %arg2[%c0, %c0_1] : memref<256x512xi8, #tpu.memory_space<vmem>>, vector<256x512xi8>
    %4 = arith.sitofp %3 : vector<256x512xi8> to vector<256x512xf32>
    %5 = arith.truncf %4 : vector<256x512xf32> to vector<256x512xbf16>
    %c0_2 = arith.constant 0 : index
    %c0_3 = arith.constant 0 : index
    %6 = vector.load %arg7[%c0_2, %c0_3] : memref<256x128xf32, #tpu.memory_space<vmem>>, vector<256x128xf32>
    %c0_4 = arith.constant 0 : index
    %c0_5 = arith.constant 0 : index
    %7 = vector.load %arg3[%c0_4, %c0_5] : memref<512x128xbf16, #tpu.memory_space<vmem>>, vector<512x128xbf16>
    %cst = arith.constant dense<0.000000e+00> : vector<256x128xf32>
    %8 = tpu.matmul %5, %7, %cst {dimension_numbers = #tpu.dot_dimension_numbers<[1], [0], [0], [1], [0, 0, 1, 1], [], []>} : vector<256x512xbf16>, vector<512x128xbf16>, vector<256x128xf32> -> vector<256x128xf32>
    %9 = arith.addf %6, %8 : vector<256x128xf32>
    %c0_6 = arith.constant 0 : index
    %c0_7 = arith.constant 0 : index
    %10 = vector.load %arg7[%c0_6, %c0_7] : memref<256x128xf32, #tpu.memory_space<vmem>>, vector<256x128xf32>
    tpu.vector_store %arg7[%c0_6, %c0_7], %9 {strides = array<i32>} : memref<256x128xf32, #tpu.memory_space<vmem>>, vector<256x128xf32>,
    %c0_i32_8 = arith.constant 0 : i32
    %11 = arith.cmpi eq, %arg1, %c0_i32_8 : i32
    %12 = arith.extui %11 : i1 to i32
    %c0_i32_9 = arith.constant 0 : i32
    %13 = arith.cmpi ne, %12, %c0_i32_9 : i32
    scf.if %13 {
      %c0_10 = arith.constant 0 : index
      %c0_11 = arith.constant 0 : index
      %14 = vector.load %arg7[%c0_10, %c0_11] : memref<256x128xf32, #tpu.memory_space<vmem>>, vector<256x128xf32>
      %c0_12 = arith.constant 0 : index
      %c0_13 = arith.constant 0 : index
      %15 = vector.load %arg5[%c0_12, %c0_13] : memref<256x1xf32, #tpu.memory_space<vmem>>, vector<256x1xf32>
      %16 = vector.broadcast %15 : vector<256x1xf32> to vector<256x128xf32>
      %17 = arith.mulf %14, %16 : vector<256x128xf32>
      %c0_14 = arith.constant 0 : index
      %c0_15 = arith.constant 0 : index
      %18 = vector.load %arg4[%c0_14, %c0_15] : memref<256x128xf32, #tpu.memory_space<vmem>>, vector<256x128xf32>
      %19 = arith.addf %17, %18 : vector<256x128xf32>
      %c0_16 = arith.constant 0 : index
      %c0_17 = arith.constant 0 : index
      %20 = vector.load %arg6[%c0_16, %c0_17] : memref<256x128xf32, #tpu.memory_space<vmem>>, vector<256x128xf32>
      tpu.vector_store %arg6[%c0_16, %c0_17], %19 {strides = array<i32>} : memref<256x128xf32, #tpu.memory_space<vmem>>, vector<256x128xf32>,
    } else {
    }
    return
  }
  func.func @transform_0(%arg0: i32, %arg1: i32) -> (i32, i32) {
    %c0_i32 = arith.constant 0 : i32
    return %arg0, %arg1 : i32, i32
  }
  func.func @transform_1(%arg0: i32, %arg1: i32) -> (i32, i32) {
    %c0_i32 = arith.constant 0 : i32
    %c0_i32_0 = arith.constant 0 : i32
    return %arg1, %c0_i32 : i32, i32
  }
  func.func @transform_2(%arg0: i32, %arg1: i32) -> (i32, i32) {
    %c0_i32 = arith.constant 0 : i32
    %c0_i32_0 = arith.constant 0 : i32
    return %arg0, %c0_i32 : i32, i32
  }
  func.func @transform_3(%arg0: i32, %arg1: i32) -> (i32, i32) {
    %c0_i32 = arith.constant 0 : i32
    %c0_i32_0 = arith.constant 0 : i32
    return %arg0, %c0_i32 : i32, i32
  }
  func.func @transform_4(%arg0: i32, %arg1: i32) -> (i32, i32) {
    %c0_i32 = arith.constant 0 : i32
    %c0_i32_0 = arith.constant 0 : i32
    return %arg0, %c0_i32 : i32, i32
  }
}

module attributes {stable_mosaic.version = 11 : i64} {
  func.func @_proj_kernel(%arg0: i32, %arg1: memref<256x128xbf16, #tpu.memory_space<vmem>>, %arg2: memref<128x128xbf16, #tpu.memory_space<vmem>>, %arg3: memref<128x128xbf16, #tpu.memory_space<vmem>>, %arg4: memref<1x128xf32, #tpu.memory_space<vmem>>, %arg5: memref<256x128xf32, #tpu.memory_space<vmem>>, %arg6: memref<256x128xbf16, #tpu.memory_space<vmem>>) attributes {dimension_semantics = [#tpu.dimension_semantics<parallel>], iteration_bounds = array<i64: 2>, scalar_prefetch = 0 : i64, scratch_operands = 0 : i64, tpu.core_type = #tpu.core_type<tc>, window_params = [{transform_indices = @transform_0, window_bounds = array<i64: 256, 128>}, {pipeline_mode = #tpu.pipeline_mode<synchronous>, transform_indices = @transform_1, window_bounds = array<i64: 128, 128>}, {pipeline_mode = #tpu.pipeline_mode<synchronous>, transform_indices = @transform_2, window_bounds = array<i64: 128, 128>}, {pipeline_mode = #tpu.pipeline_mode<synchronous>, transform_indices = @transform_3, window_bounds = array<i64: 1, 128>}, {transform_indices = @transform_4, window_bounds = array<i64: 256, 128>}, {transform_indices = @transform_5, window_bounds = array<i64: 256, 128>}]} {
    %c0 = arith.constant 0 : index
    %c0_0 = arith.constant 0 : index
    %0 = vector.load %arg1[%c0, %c0_0] : memref<256x128xbf16, #tpu.memory_space<vmem>>, vector<256x128xbf16>
    %c0_1 = arith.constant 0 : index
    %c0_2 = arith.constant 0 : index
    %1 = vector.load %arg2[%c0_1, %c0_2] : memref<128x128xbf16, #tpu.memory_space<vmem>>, vector<128x128xbf16>
    %cst = arith.constant dense<0.000000e+00> : vector<256x128xf32>
    %2 = tpu.matmul %0, %1, %cst {dimension_numbers = #tpu.dot_dimension_numbers<[1], [0], [0], [1], [0, 0, 1, 1], [], []>} : vector<256x128xbf16>, vector<128x128xbf16>, vector<256x128xf32> -> vector<256x128xf32>
    %c0_3 = arith.constant 0 : index
    %c0_4 = arith.constant 0 : index
    %3 = vector.load %arg4[%c0_3, %c0_4] : memref<1x128xf32, #tpu.memory_space<vmem>>, vector<1x128xf32>
    %4 = vector.broadcast %3 : vector<1x128xf32> to vector<256x128xf32>
    %5 = arith.addf %2, %4 : vector<256x128xf32>
    %c0_5 = arith.constant 0 : index
    %c0_6 = arith.constant 0 : index
    %6 = vector.load %arg5[%c0_5, %c0_6] : memref<256x128xf32, #tpu.memory_space<vmem>>, vector<256x128xf32>
    tpu.vector_store %arg5[%c0_5, %c0_6], %5 {strides = array<i32>} : memref<256x128xf32, #tpu.memory_space<vmem>>, vector<256x128xf32>,
    %c0_7 = arith.constant 0 : index
    %c0_8 = arith.constant 0 : index
    %7 = vector.load %arg3[%c0_7, %c0_8] : memref<128x128xbf16, #tpu.memory_space<vmem>>, vector<128x128xbf16>
    %cst_9 = arith.constant dense<0.000000e+00> : vector<256x128xf32>
    %8 = tpu.matmul %0, %7, %cst_9 {dimension_numbers = #tpu.dot_dimension_numbers<[1], [0], [0], [1], [0, 0, 1, 1], [], []>} : vector<256x128xbf16>, vector<128x128xbf16>, vector<256x128xf32> -> vector<256x128xf32>
    %9 = arith.truncf %8 : vector<256x128xf32> to vector<256x128xbf16>
    %c0_10 = arith.constant 0 : index
    %c0_11 = arith.constant 0 : index
    %10 = vector.load %arg6[%c0_10, %c0_11] : memref<256x128xbf16, #tpu.memory_space<vmem>>, vector<256x128xbf16>
    tpu.vector_store %arg6[%c0_10, %c0_11], %9 {strides = array<i32>} : memref<256x128xbf16, #tpu.memory_space<vmem>>, vector<256x128xbf16>,
    return
  }
  func.func @transform_0(%arg0: i32) -> (i32, i32) {
    %c0_i32 = arith.constant 0 : i32
    %c0_i32_0 = arith.constant 0 : i32
    return %arg0, %c0_i32 : i32, i32
  }
  func.func @transform_1(%arg0: i32) -> (i32, i32) {
    %c0_i32 = arith.constant 0 : i32
    %c0_i32_0 = arith.constant 0 : i32
    %c0_i32_1 = arith.constant 0 : i32
    return %c0_i32, %c0_i32_0 : i32, i32
  }
  func.func @transform_2(%arg0: i32) -> (i32, i32) {
    %c0_i32 = arith.constant 0 : i32
    %c0_i32_0 = arith.constant 0 : i32
    %c0_i32_1 = arith.constant 0 : i32
    return %c0_i32, %c0_i32_0 : i32, i32
  }
  func.func @transform_3(%arg0: i32) -> (i32, i32) {
    %c0_i32 = arith.constant 0 : i32
    %c0_i32_0 = arith.constant 0 : i32
    %c0_i32_1 = arith.constant 0 : i32
    return %c0_i32, %c0_i32_0 : i32, i32
  }
  func.func @transform_4(%arg0: i32) -> (i32, i32) {
    %c0_i32 = arith.constant 0 : i32
    %c0_i32_0 = arith.constant 0 : i32
    return %arg0, %c0_i32 : i32, i32
  }
  func.func @transform_5(%arg0: i32) -> (i32, i32) {
    %c0_i32 = arith.constant 0 : i32
    %c0_i32_0 = arith.constant 0 : i32
    return %arg0, %c0_i32 : i32, i32
  }
}

module attributes {stable_mosaic.version = 11 : i64} {
  func.func @_agg_kernel(%arg0: i32, %arg1: i32, %arg2: memref<256x512xi8, #tpu.memory_space<vmem>>, %arg3: memref<512x128xbf16, #tpu.memory_space<vmem>>, %arg4: memref<256x128xf32, #tpu.memory_space<vmem>>, %arg5: memref<256x1xf32, #tpu.memory_space<vmem>>, %arg6: memref<256x128xbf16, #tpu.memory_space<vmem>>, %arg7: memref<256x128xf32, #tpu.memory_space<vmem>>) attributes {dimension_semantics = [#tpu.dimension_semantics<parallel>, #tpu.dimension_semantics<arbitrary>], iteration_bounds = array<i64: 2, 1>, scalar_prefetch = 0 : i64, scratch_operands = 1 : i64, tpu.core_type = #tpu.core_type<tc>, window_params = [{transform_indices = @transform_0, window_bounds = array<i64: 256, 512>}, {transform_indices = @transform_1, window_bounds = array<i64: 512, 128>}, {transform_indices = @transform_2, window_bounds = array<i64: 256, 128>}, {transform_indices = @transform_3, window_bounds = array<i64: 256, 1>}, {transform_indices = @transform_4, window_bounds = array<i64: 256, 128>}]} {
    %c0_i32 = arith.constant 0 : i32
    %0 = arith.cmpi eq, %arg1, %c0_i32 : i32
    %1 = arith.extui %0 : i1 to i32
    %c0_i32_0 = arith.constant 0 : i32
    %2 = arith.cmpi ne, %1, %c0_i32_0 : i32
    scf.if %2 {
      %cst_10 = arith.constant 0.000000e+00 : f32
      %14 = vector.broadcast %cst_10 : f32 to vector<256x128xf32>
      %c0_11 = arith.constant 0 : index
      %c0_12 = arith.constant 0 : index
      %15 = vector.load %arg7[%c0_11, %c0_12] : memref<256x128xf32, #tpu.memory_space<vmem>>, vector<256x128xf32>
      tpu.vector_store %arg7[%c0_11, %c0_12], %14 {strides = array<i32>} : memref<256x128xf32, #tpu.memory_space<vmem>>, vector<256x128xf32>,
    } else {
    }
    %c0 = arith.constant 0 : index
    %c0_1 = arith.constant 0 : index
    %3 = vector.load %arg2[%c0, %c0_1] : memref<256x512xi8, #tpu.memory_space<vmem>>, vector<256x512xi8>
    %4 = arith.sitofp %3 : vector<256x512xi8> to vector<256x512xf32>
    %5 = arith.truncf %4 : vector<256x512xf32> to vector<256x512xbf16>
    %c0_2 = arith.constant 0 : index
    %c0_3 = arith.constant 0 : index
    %6 = vector.load %arg7[%c0_2, %c0_3] : memref<256x128xf32, #tpu.memory_space<vmem>>, vector<256x128xf32>
    %c0_4 = arith.constant 0 : index
    %c0_5 = arith.constant 0 : index
    %7 = vector.load %arg3[%c0_4, %c0_5] : memref<512x128xbf16, #tpu.memory_space<vmem>>, vector<512x128xbf16>
    %cst = arith.constant dense<0.000000e+00> : vector<256x128xf32>
    %8 = tpu.matmul %5, %7, %cst {dimension_numbers = #tpu.dot_dimension_numbers<[1], [0], [0], [1], [0, 0, 1, 1], [], []>} : vector<256x512xbf16>, vector<512x128xbf16>, vector<256x128xf32> -> vector<256x128xf32>
    %9 = arith.addf %6, %8 : vector<256x128xf32>
    %c0_6 = arith.constant 0 : index
    %c0_7 = arith.constant 0 : index
    %10 = vector.load %arg7[%c0_6, %c0_7] : memref<256x128xf32, #tpu.memory_space<vmem>>, vector<256x128xf32>
    tpu.vector_store %arg7[%c0_6, %c0_7], %9 {strides = array<i32>} : memref<256x128xf32, #tpu.memory_space<vmem>>, vector<256x128xf32>,
    %c0_i32_8 = arith.constant 0 : i32
    %11 = arith.cmpi eq, %arg1, %c0_i32_8 : i32
    %12 = arith.extui %11 : i1 to i32
    %c0_i32_9 = arith.constant 0 : i32
    %13 = arith.cmpi ne, %12, %c0_i32_9 : i32
    scf.if %13 {
      %c0_10 = arith.constant 0 : index
      %c0_11 = arith.constant 0 : index
      %14 = vector.load %arg7[%c0_10, %c0_11] : memref<256x128xf32, #tpu.memory_space<vmem>>, vector<256x128xf32>
      %c0_12 = arith.constant 0 : index
      %c0_13 = arith.constant 0 : index
      %15 = vector.load %arg5[%c0_12, %c0_13] : memref<256x1xf32, #tpu.memory_space<vmem>>, vector<256x1xf32>
      %16 = vector.broadcast %15 : vector<256x1xf32> to vector<256x128xf32>
      %17 = arith.mulf %14, %16 : vector<256x128xf32>
      %c0_14 = arith.constant 0 : index
      %c0_15 = arith.constant 0 : index
      %18 = vector.load %arg4[%c0_14, %c0_15] : memref<256x128xf32, #tpu.memory_space<vmem>>, vector<256x128xf32>
      %19 = arith.addf %17, %18 : vector<256x128xf32>
      %cst_16 = arith.constant 0.000000e+00 : f32
      %20 = vector.broadcast %cst_16 : f32 to vector<256x128xf32>
      %21 = arith.maximumf %19, %20 : vector<256x128xf32>
      %22 = arith.truncf %21 : vector<256x128xf32> to vector<256x128xbf16>
      %c0_17 = arith.constant 0 : index
      %c0_18 = arith.constant 0 : index
      %23 = vector.load %arg6[%c0_17, %c0_18] : memref<256x128xbf16, #tpu.memory_space<vmem>>, vector<256x128xbf16>
      tpu.vector_store %arg6[%c0_17, %c0_18], %22 {strides = array<i32>} : memref<256x128xbf16, #tpu.memory_space<vmem>>, vector<256x128xbf16>,
    } else {
    }
    return
  }
  func.func @transform_0(%arg0: i32, %arg1: i32) -> (i32, i32) {
    %c0_i32 = arith.constant 0 : i32
    return %arg0, %arg1 : i32, i32
  }
  func.func @transform_1(%arg0: i32, %arg1: i32) -> (i32, i32) {
    %c0_i32 = arith.constant 0 : i32
    %c0_i32_0 = arith.constant 0 : i32
    return %arg1, %c0_i32 : i32, i32
  }
  func.func @transform_2(%arg0: i32, %arg1: i32) -> (i32, i32) {
    %c0_i32 = arith.constant 0 : i32
    %c0_i32_0 = arith.constant 0 : i32
    return %arg0, %c0_i32 : i32, i32
  }
  func.func @transform_3(%arg0: i32, %arg1: i32) -> (i32, i32) {
    %c0_i32 = arith.constant 0 : i32
    %c0_i32_0 = arith.constant 0 : i32
    return %arg0, %c0_i32 : i32, i32
  }
  func.func @transform_4(%arg0: i32, %arg1: i32) -> (i32, i32) {
    %c0_i32 = arith.constant 0 : i32
    %c0_i32_0 = arith.constant 0 : i32
    return %arg0, %c0_i32 : i32, i32
  }
}

</mosaic_0001>

<bundles_post_ra>
// kernel: graphsage_forward.6
= control target key start
LH: loop header
LB: loop body
LE: loop exit
PB: predicated region body
PF: predicated region fallthrough
CT: control target
= control target key end

     0   :  { %s1537_s18 = smov 0   ;;  %s1720_s0 = inlined_call_operand.vmem [shape: bf16[512,128], index: 0, kind: input, shape index: {}]   ;;  %s1721_s1 = inlined_call_operand.vmem [shape: bf16[128,128], index: 1, kind: input, shape index: {}]   ;;  %s1722_s2 = inlined_call_operand.vmem [shape: bf16[128,128], index: 2, kind: input, shape index: {}]   ;;  %s1723_s3 = inlined_call_operand.vmem [shape: f32[1,128], index: 3, kind: input, shape index: {}]   ;;  %s1724_s4 = inlined_call_operand.vmem [shape: f32[512,128], index: 4, kind: output, shape index: {0}]   ;;  %s1725_s5 = inlined_call_operand.vmem [shape: bf16[512,128], index: 5, kind: output, shape index: {1}]  }
   0x1 LB: > { %s1110_s19 = sadd.s32 4294967295, %s1505_s18   ;;  %p1114_p0 = scmp.ge.s32.totalorder %s1505_s18, 1  ;;  %s1505_s18 = sphi %s1537_s18, %s16_s18  }
   0x2   : > { %p191_p1 = scmp.lt.s32.totalorder %s1505_s18, 3 }
   0x4   : > { %p192_p2 = pnand %p1114_p0, %p191_p1 }
   0x5   : > { %s1115_s22 = sshll.u32 (!%p192_p2), %s1110_s19, 5 }
   0x6   : > { %195 = sbr.rel (%p192_p2) target bundleno = 303 (0x12f), region = 36  ;;  %p225_p3 = scmp.lt.s32.totalorder (!%p192_p2), %s1115_s22, 63 }
   0xb   : > { %v1467_v0 = vld [vmem:[%s1721_s1 + $0x38] sm:$0xff]   ;;  %v1469_v2 = vld [vmem:[%s1721_s1 + $0x30] sm:$0xff]   ;;  %v1471_v4 = vld [vmem:[%s1721_s1 + $0x28] sm:$0xff]   ;;  %s1727_s22 = smov (!%p225_p3, %s1115_s22), 63 }
   0xc   : > { %v1468_v1 = vld [vmem:[%s1722_s2 + $0x38] sm:$0xff]   ;;  %1363 = vmatprep.subr.bf16.mxu0 %v1467_v0  ;;  %v1470_v3 = vld [vmem:[%s1722_s2 + $0x30] sm:$0xff]   ;;  %v1472_v5 = vld [vmem:[%s1722_s2 + $0x28] sm:$0xff]   ;;  %s1116_s12 = sshll.u32 %s1727_s22, 2  ;;  %s1118_s9 = sshll.u32 %s1727_s22, 3 }
   0xd   : > { %1411 = vmatprep.subr.bf16.mxu1 %v1468_v1  ;;  %1364 = vmatpush3.bf16.msra.mxu0 %v1467_v0  ;;  %v1473_v6 = vld [vmem:[%s1721_s1 + $0x20] sm:$0xff]   ;;  %v1475_v8 = vld [vmem:[%s1721_s1 + $0x18] sm:$0xff]   ;;  %s1583_s20 = scalar_lea.vmem %s1720_s0, %s1116_s12  ;;  %v1477_v10 = vld [vmem:[%s1721_s1 + $0x10] sm:$0xff]   ;;  %s1628_s15 = scalar_lea.vmem %s1724_s4, %s1118_s9 }
   0xe   : > { %1412 = vmatpush3.bf16.msra.mxu1 %v1468_v1  ;;  %1365 = vmatprep.subr.bf16.mxu0 %v1469_v2  ;;  %v1474_v7 = vld [vmem:[%s1722_s2 + $0x20] sm:$0xff]   ;;  %v1476_v9 = vld [vmem:[%s1722_s2 + $0x18] sm:$0xff]   ;;  %v1478_v12 = vld [vmem:[%s1722_s2 + $0x10] sm:$0xff]   ;;  %s1640_s19 = scalar_lea.vmem %s1725_s5, %s1116_s12 }
   0xf   : > { %1413 = vmatprep.subr.bf16.mxu1 %v1470_v3  ;;  %v1483_v11 = vld [vmem:[%s1583_s20] sm:$0xff]   ;;  %v1479_v13 = vld [vmem:[%s1721_s1 + $0x8] sm:$0xff]   ;;  %v1485_v18 = vld [vmem:[%s1583_s20 + $0x10] sm:$0xff]  }
  0x10   : > { %1379 = vmatprep.mubr.bf16.mxu0 %v1483_v11  ;;  %1427 = vmatprep.mubr.bf16.mxu1 %v1483_v11  ;;  %v1480_v14 = vld [vmem:[%s1722_s2 + $0x8] sm:$0xff]   ;;  %v1481_v15 = vld [vmem:[%s1721_s1] sm:$0xff]   ;;  %v1486_v19 = vld [vmem:[%s1583_s20 + $0x18] sm:$0xff]  }
  0x11   : > { %1366 = vmatpush3.bf16.msra.mxu0 %v1469_v2  ;;  %v1482_v16 = vld [vmem:[%s1722_s2] sm:$0xff]   ;;  %v1484_v17 = vld [vmem:[%s1583_s20 + $0x8] sm:$0xff]   ;;  %v1489_v22 = vld [vmem:[%s1583_s20 + $0x30] sm:$0xff]  }
  0x12   : > { %1414 = vmatpush3.bf16.msra.mxu1 %v1470_v3  ;;  %1367 = vmatprep.subr.bf16.mxu0 %v1471_v4  ;;  %v1487_v20 = vld [vmem:[%s1583_s20 + $0x20] sm:$0xff]   ;;  %v1488_v21 = vld [vmem:[%s1583_s20 + $0x28] sm:$0xff]   ;;  %v1490_v23 = vld [vmem:[%s1583_s20 + $0x38] sm:$0xff]  }
  0x13   : > { %1415 = vmatprep.subr.bf16.mxu1 %v1472_v5  ;;  %v1491_v24 = vld [vmem:[%s1583_s20 + $0x40] sm:$0xff]   ;;  %v1492_v25 = vld [vmem:[%s1583_s20 + $0x48] sm:$0xff]   ;;  %v1493_v26 = vld [vmem:[%s1583_s20 + $0x50] sm:$0xff]  }
  0x14   : > { %v1494_v27 = vld [vmem:[%s1583_s20 + $0x58] sm:$0xff]   ;;  %v1495_v28 = vld [vmem:[%s1583_s20 + $0x60] sm:$0xff]   ;;  %v1496_v29 = vld [vmem:[%s1583_s20 + $0x68] sm:$0xff]  }
  0x15   : > { %1368 = vmatpush3.bf16.msra.mxu0 %v1471_v4  ;;  %v1497_v30 = vld [vmem:[%s1583_s20 + $0x70] sm:$0xff]   ;;  %v1498_v31 = vld [vmem:[%s1583_s20 + $0x78] sm:$0xff]   ;;  %v1623_v32 = vld [vmem:[%s1723_s3] ss:$0 sm:$0xff] }
  0x16   : > { %1416 = vmatpush3.bf16.msra.mxu1 %v1472_v5  ;;  %1369 = vmatprep.subr.bf16.mxu0 %v1473_v6 }
  0x17   : > { %1417 = vmatprep.subr.bf16.mxu1 %v1474_v7 }
  0x19   : > { %1370 = vmatpush3.bf16.msra.mxu0 %v1473_v6 }
  0x1a   : > { %1418 = vmatpush3.bf16.msra.mxu1 %v1474_v7  ;;  %1371 = vmatprep.subr.bf16.mxu0 %v1475_v8 }
  0x1b   : > { %1419 = vmatprep.subr.bf16.mxu1 %v1476_v9 }
  0x1d   : > { %1372 = vmatpush3.bf16.msra.mxu0 %v1475_v8 }
  0x1e   : > { %1420 = vmatpush3.bf16.msra.mxu1 %v1476_v9  ;;  %1373 = vmatprep.subr.bf16.mxu0 %v1477_v10 }
  0x1f   : > { %1421 = vmatprep.subr.bf16.mxu1 %v1478_v12 }
  0x21   : > { %1374 = vmatpush3.bf16.msra.mxu0 %v1477_v10 }
  0x22   : > { %1422 = vmatpush3.bf16.msra.mxu1 %v1478_v12  ;;  %1375 = vmatprep.subr.bf16.mxu0 %v1479_v13 }
  0x23   : > { %1423 = vmatprep.subr.bf16.mxu1 %v1480_v14 }
  0x25   : > { %1376 = vmatpush3.bf16.msra.mxu0 %v1479_v13 }
  0x26   : > { %1424 = vmatpush3.bf16.msra.mxu1 %v1480_v14  ;;  %1377 = vmatprep.subr.bf16.mxu0 %v1481_v15 }
  0x27   : > { %1425 = vmatprep.subr.bf16.mxu1 %v1482_v16 }
  0x29   : > { %1378 = vmatpush3.bf16.msra.mxu0 %v1481_v15 }
  0x2a   : > { %1426 = vmatpush3.bf16.msra.mxu1 %v1482_v16 }
  0x2c   : > { %1380 = vmatmul.mubr.bf16.vlgmr.msra.gmra.mxu0 %v1484_v17 }
  0x2d   : > { %1428 = vmatmul.mubr.bf16.vlgmr.msra.gmra.mxu1 %v1484_v17  ;;  %1383 = vmatprep.mubr.bf16.mxu0 %v1485_v18 }
  0x2e   : > { %1431 = vmatprep.mubr.bf16.mxu1 %v1485_v18 }
  0x34   : > { %1384 = vmatmul.mubr.bf16.gmra.mxu0 %v1486_v19 }
  0x35   : > { %1432 = vmatmul.mubr.bf16.gmra.mxu1 %v1486_v19  ;;  %1387 = vmatprep.mubr.bf16.mxu0 %v1487_v20 }
  0x36   : > { %1435 = vmatprep.mubr.bf16.mxu1 %v1487_v20 }
  0x3c   : > { %1388 = vmatmul.mubr.bf16.gmra.mxu0 %v1488_v21 }
  0x3d   : > { %1436 = vmatmul.mubr.bf16.gmra.mxu1 %v1488_v21  ;;  %1391 = vmatprep.mubr.bf16.mxu0 %v1489_v22 }
  0x3e   : > { %1439 = vmatprep.mubr.bf16.mxu1 %v1489_v22 }
  0x44   : > { %1392 = vmatmul.mubr.bf16.gmra.mxu0 %v1490_v23 }
  0x45   : > { %1440 = vmatmul.mubr.bf16.gmra.mxu1 %v1490_v23  ;;  %1395 = vmatprep.mubr.bf16.mxu0 %v1491_v24 }
  0x46   : > { %1443 = vmatprep.mubr.bf16.mxu1 %v1491_v24 }
  0x4c   : > { %1396 = vmatmul.mubr.bf16.gmra.mxu0 %v1492_v25 }
  0x4d   : > { %1444 = vmatmul.mubr.bf16.gmra.mxu1 %v1492_v25  ;;  %1399 = vmatprep.mubr.bf16.mxu0 %v1493_v26 }
  0x4e   : > { %1447 = vmatprep.mubr.bf16.mxu1 %v1493_v26 }
  0x54   : > { %1400 = vmatmul.mubr.bf16.gmra.mxu0 %v1494_v27 }
  0x55   : > { %1448 = vmatmul.mubr.bf16.gmra.mxu1 %v1494_v27  ;;  %1403 = vmatprep.mubr.bf16.mxu0 %v1495_v28 }
  0x56   : > { %1451 = vmatprep.mubr.bf16.mxu1 %v1495_v28 }
  0x5c   : > { %1404 = vmatmul.mubr.bf16.gmra.mxu0 %v1496_v29 }
  0x5d   : > { %1452 = vmatmul.mubr.bf16.gmra.mxu1 %v1496_v29  ;;  %1407 = vmatprep.mubr.bf16.mxu0 %v1497_v30 }
  0x5e   : > { %1455 = vmatprep.mubr.bf16.mxu1 %v1497_v30 }
  0x64   : > { %1408 = vmatmul.mubr.bf16.gmra.mxu0 %v1498_v31 }
  0x65   : > { %1456 = vmatmul.mubr.bf16.gmra.mxu1 %v1498_v31 }
  0xec   : > { %v1381_v33 = vpop.f32.mrf.mxu0 }
  0xed   : > { %v485_v34 = vadd.f32 %v1381_v33, %v1623_v32  ;;  %v1429_v35 = vpop.f32.mrf.mxu1 }
  0xee   : > { %v476_v36 = vpop.f32.mrf.mxu0 }
  0xef   : > { %605 = vst [vmem:[%s1628_s15 + $0x10] sm:$0xff] %v485_v34  ;;  %v477_v37 = vadd.f32 %v1623_v32, %v476_v36  ;;  %v733_v38 = vpop.f32.mrf.mxu1 }
  0xf0   : > { %v1382_v39 = vpop.f32.mrf.mxu0 }
  0xf1   : > { %603 = vst [vmem:[%s1628_s15] sm:$0xff] %v477_v37  ;;  %v488_v40 = vadd.f32 %v1382_v39, %v1623_v32  ;;  %v1430_v41 = vpop.f32.mrf.mxu1 }
  0xf2   : > { %v1228_v42 = vpack.c.bf16 %v1430_v41, %v1429_v35  ;;  %v479_v43 = vpop.f32.mrf.mxu0 }
  0xf3   : > { %606 = vst [vmem:[%s1628_s15 + $0x18] sm:$0xff] %v488_v40  ;;  %v480_v44 = vadd.f32 %v1623_v32, %v479_v43  ;;  %v736_v45 = vpop.f32.mrf.mxu1 }
  0xf4   : > { %1300 = vst [vmem:[%s1640_s19 + $0x8] sm:$0xff] %v1228_v42   ;;  %v1223_v46 = vpack.c.bf16 %v736_v45, %v733_v38  ;;  %v1385_v47 = vpop.f32.mrf.mxu0 }
  0xf5   : > { %604 = vst [vmem:[%s1628_s15 + $0x8] sm:$0xff] %v480_v44  ;;  %v501_v48 = vadd.f32 %v1385_v47, %v1623_v32  ;;  %v1433_v49 = vpop.f32.mrf.mxu1 }
  0xf6   : > { %1224 = vst [vmem:[%s1640_s19] sm:$0xff] %v1223_v46   ;;  %v492_v50 = vpop.f32.mrf.mxu0 }
  0xf7   : > { %609 = vst [vmem:[%s1628_s15 + $0x30] sm:$0xff] %v501_v48  ;;  %v493_v51 = vadd.f32 %v1623_v32, %v492_v50  ;;  %v749_v52 = vpop.f32.mrf.mxu1 }
  0xf8   : > { %v1386_v53 = vpop.f32.mrf.mxu0 }
  0xf9   : > { %607 = vst [vmem:[%s1628_s15 + $0x20] sm:$0xff] %v493_v51  ;;  %v504_v54 = vadd.f32 %v1386_v53, %v1623_v32  ;;  %v1434_v55 = vpop.f32.mrf.mxu1 }
  0xfa   : > { %v1238_v56 = vpack.c.bf16 %v1434_v55, %v1433_v49  ;;  %v495_v57 = vpop.f32.mrf.mxu0 }
  0xfb   : > { %610 = vst [vmem:[%s1628_s15 + $0x38] sm:$0xff] %v504_v54  ;;  %v496_v58 = vadd.f32 %v1623_v32, %v495_v57  ;;  %v752_v59 = vpop.f32.mrf.mxu1 }
  0xfc   : > { %1302 = vst [vmem:[%s1640_s19 + $0x18] sm:$0xff] %v1238_v56   ;;  %v1233_v60 = vpack.c.bf16 %v752_v59, %v749_v52  ;;  %v1389_v61 = vpop.f32.mrf.mxu0 }
  0xfd   : > { %608 = vst [vmem:[%s1628_s15 + $0x28] sm:$0xff] %v496_v58  ;;  %v517_v62 = vadd.f32 %v1389_v61, %v1623_v32  ;;  %v1437_v63 = vpop.f32.mrf.mxu1 }
  0xfe   : > { %1301 = vst [vmem:[%s1640_s19 + $0x10] sm:$0xff] %v1233_v60   ;;  %v508_v0 = vpop.f32.mrf.mxu0 }
  0xff   : > { %613 = vst [vmem:[%s1628_s15 + $0x50] sm:$0xff] %v517_v62  ;;  %v509_v1 = vadd.f32 %v1623_v32, %v508_v0  ;;  %v765_v2 = vpop.f32.mrf.mxu1 }
 0x100   : > { %v1390_v3 = vpop.f32.mrf.mxu0 }
 0x101   : > { %611 = vst [vmem:[%s1628_s15 + $0x40] sm:$0xff] %v509_v1  ;;  %v520_v4 = vadd.f32 %v1390_v3, %v1623_v32  ;;  %v1438_v5 = vpop.f32.mrf.mxu1 }
 0x102   : > { %v1248_v6 = vpack.c.bf16 %v1438_v5, %v1437_v63  ;;  %v511_v7 = vpop.f32.mrf.mxu0 }
 0x103   : > { %614 = vst [vmem:[%s1628_s15 + $0x58] sm:$0xff] %v520_v4  ;;  %v512_v8 = vadd.f32 %v1623_v32, %v511_v7  ;;  %v768_v9 = vpop.f32.mrf.mxu1 }
 0x104   : > { %1304 = vst [vmem:[%s1640_s19 + $0x28] sm:$0xff] %v1248_v6   ;;  %v1243_v10 = vpack.c.bf16 %v768_v9, %v765_v2  ;;  %v1393_v11 = vpop.f32.mrf.mxu0 }
 0x105   : > { %612 = vst [vmem:[%s1628_s15 + $0x48] sm:$0xff] %v512_v8  ;;  %v533_v12 = vadd.f32 %v1393_v11, %v1623_v32  ;;  %v1441_v13 = vpop.f32.mrf.mxu1 }
 0x106   : > { %1303 = vst [vmem:[%s1640_s19 + $0x20] sm:$0xff] %v1243_v10   ;;  %v524_v14 = vpop.f32.mrf.mxu0 }
 0x107   : > { %617 = vst [vmem:[%s1628_s15 + $0x70] sm:$0xff] %v533_v12  ;;  %v525_v15 = vadd.f32 %v1623_v32, %v524_v14  ;;  %v781_v16 = vpop.f32.mrf.mxu1 }
 0x108   : > { %v1394_v17 = vpop.f32.mrf.mxu0 }
 0x109   : > { %615 = vst [vmem:[%s1628_s15 + $0x60] sm:$0xff] %v525_v15  ;;  %v536_v18 = vadd.f32 %v1394_v17, %v1623_v32  ;;  %v1442_v19 = vpop.f32.mrf.mxu1 }
 0x10a   : > { %v1258_v20 = vpack.c.bf16 %v1442_v19, %v1441_v13  ;;  %v527_v21 = vpop.f32.mrf.mxu0 }
 0x10b   : > { %618 = vst [vmem:[%s1628_s15 + $0x78] sm:$0xff] %v536_v18  ;;  %v528_v22 = vadd.f32 %v1623_v32, %v527_v21  ;;  %v784_v23 = vpop.f32.mrf.mxu1 }
 0x10c   : > { %1306 = vst [vmem:[%s1640_s19 + $0x38] sm:$0xff] %v1258_v20   ;;  %v1253_v24 = vpack.c.bf16 %v784_v23, %v781_v16  ;;  %v1397_v25 = vpop.f32.mrf.mxu0 }
 0x10d   : > { %616 = vst [vmem:[%s1628_s15 + $0x68] sm:$0xff] %v528_v22  ;;  %v549_v26 = vadd.f32 %v1397_v25, %v1623_v32  ;;  %v1445_v27 = vpop.f32.mrf.mxu1 }
 0x10e   : > { %1305 = vst [vmem:[%s1640_s19 + $0x30] sm:$0xff] %v1253_v24   ;;  %v540_v28 = vpop.f32.mrf.mxu0 }
 0x10f   : > { %621 = vst [vmem:[%s1628_s15 + $0x90] sm:$0xff] %v549_v26  ;;  %v541_v29 = vadd.f32 %v1623_v32, %v540_v28  ;;  %v797_v30 = vpop.f32.mrf.mxu1 }
 0x110   : > { %v1398_v31 = vpop.f32.mrf.mxu0 }
 0x111   : > { %619 = vst [vmem:[%s1628_s15 + $0x80] sm:$0xff] %v541_v29  ;;  %v552_v33 = vadd.f32 %v1398_v31, %v1623_v32  ;;  %v1446_v34 = vpop.f32.mrf.mxu1 }
 0x112   : > { %v1268_v35 = vpack.c.bf16 %v1446_v34, %v1445_v27  ;;  %v543_v36 = vpop.f32.mrf.mxu0 }
 0x113   : > { %622 = vst [vmem:[%s1628_s15 + $0x98] sm:$0xff] %v552_v33  ;;  %v544_v37 = vadd.f32 %v1623_v32, %v543_v36  ;;  %v800_v38 = vpop.f32.mrf.mxu1 }
 0x114   : > { %1308 = vst [vmem:[%s1640_s19 + $0x48] sm:$0xff] %v1268_v35   ;;  %v1263_v39 = vpack.c.bf16 %v800_v38, %v797_v30  ;;  %v1401_v40 = vpop.f32.mrf.mxu0 }
 0x115   : > { %620 = vst [vmem:[%s1628_s15 + $0x88] sm:$0xff] %v544_v37  ;;  %v565_v41 = vadd.f32 %v1401_v40, %v1623_v32  ;;  %v1449_v42 = vpop.f32.mrf.mxu1 }
 0x116   : > { %1307 = vst [vmem:[%s1640_s19 + $0x40] sm:$0xff] %v1263_v39   ;;  %v556_v43 = vpop.f32.mrf.mxu0 }
 0x117   : > { %625 = vst [vmem:[%s1628_s15 + $0xb0] sm:$0xff] %v565_v41  ;;  %v557_v44 = vadd.f32 %v1623_v32, %v556_v43  ;;  %v813_v45 = vpop.f32.mrf.mxu1 }
 0x118   : > { %v1402_v46 = vpop.f32.mrf.mxu0 }
 0x119   : > { %623 = vst [vmem:[%s1628_s15 + $0xa0] sm:$0xff] %v557_v44  ;;  %v568_v47 = vadd.f32 %v1402_v46, %v1623_v32  ;;  %v1450_v48 = vpop.f32.mrf.mxu1 }
 0x11a   : > { %v1278_v49 = vpack.c.bf16 %v1450_v48, %v1449_v42  ;;  %v559_v50 = vpop.f32.mrf.mxu0 }
 0x11b   : > { %626 = vst [vmem:[%s1628_s15 + $0xb8] sm:$0xff] %v568_v47  ;;  %v560_v51 = vadd.f32 %v1623_v32, %v559_v50  ;;  %v816_v52 = vpop.f32.mrf.mxu1 }
 0x11c   : > { %1310 = vst [vmem:[%s1640_s19 + $0x58] sm:$0xff] %v1278_v49   ;;  %v1273_v53 = vpack.c.bf16 %v816_v52, %v813_v45  ;;  %v1405_v54 = vpop.f32.mrf.mxu0 }
 0x11d   : > { %624 = vst [vmem:[%s1628_s15 + $0xa8] sm:$0xff] %v560_v51  ;;  %v581_v55 = vadd.f32 %v1405_v54, %v1623_v32  ;;  %v1453_v56 = vpop.f32.mrf.mxu1 }
 0x11e   : > { %1309 = vst [vmem:[%s1640_s19 + $0x50] sm:$0xff] %v1273_v53   ;;  %v572_v57 = vpop.f32.mrf.mxu0 }
 0x11f   : > { %629 = vst [vmem:[%s1628_s15 + $0xd0] sm:$0xff] %v581_v55  ;;  %v573_v58 = vadd.f32 %v1623_v32, %v572_v57  ;;  %v829_v59 = vpop.f32.mrf.mxu1 }
 0x120   : > { %v1406_v60 = vpop.f32.mrf.mxu0 }
 0x121   : > { %627 = vst [vmem:[%s1628_s15 + $0xc0] sm:$0xff] %v573_v58  ;;  %v584_v61 = vadd.f32 %v1406_v60, %v1623_v32  ;;  %v1454_v62 = vpop.f32.mrf.mxu1 }
 0x122   : > { %v1288_v63 = vpack.c.bf16 %v1454_v62, %v1453_v56  ;;  %v575_v0 = vpop.f32.mrf.mxu0 }
 0x123   : > { %630 = vst [vmem:[%s1628_s15 + $0xd8] sm:$0xff] %v584_v61  ;;  %v576_v1 = vadd.f32 %v1623_v32, %v575_v0  ;;  %v832_v2 = vpop.f32.mrf.mxu1 }
 0x124   : > { %1312 = vst [vmem:[%s1640_s19 + $0x68] sm:$0xff] %v1288_v63   ;;  %v1283_v3 = vpack.c.bf16 %v832_v2, %v829_v59  ;;  %v1409_v4 = vpop.f32.mrf.mxu0 }
 0x125   : > { %628 = vst [vmem:[%s1628_s15 + $0xc8] sm:$0xff] %v576_v1  ;;  %v597_v5 = vadd.f32 %v1409_v4, %v1623_v32  ;;  %v1457_v6 = vpop.f32.mrf.mxu1 }
 0x126   : > { %1311 = vst [vmem:[%s1640_s19 + $0x60] sm:$0xff] %v1283_v3   ;;  %v588_v7 = vpop.f32.mrf.mxu0 }
 0x127   : > { %633 = vst [vmem:[%s1628_s15 + $0xf0] sm:$0xff] %v597_v5  ;;  %v589_v8 = vadd.f32 %v1623_v32, %v588_v7  ;;  %v845_v9 = vpop.f32.mrf.mxu1 }
 0x128   : > { %v1410_v10 = vpop.f32.mrf.mxu0 }
 0x129   : > { %631 = vst [vmem:[%s1628_s15 + $0xe0] sm:$0xff] %v589_v8  ;;  %v600_v11 = vadd.f32 %v1410_v10, %v1623_v32  ;;  %v1458_v12 = vpop.f32.mrf.mxu1 }
 0x12a   : > { %v1298_v13 = vpack.c.bf16 %v1458_v12, %v1457_v6  ;;  %v591_v14 = vpop.f32.mrf.mxu0 }
 0x12b   : > { %634 = vst [vmem:[%s1628_s15 + $0xf8] sm:$0xff] %v600_v11  ;;  %v592_v15 = vadd.f32 %v1623_v32, %v591_v14  ;;  %v848_v16 = vpop.f32.mrf.mxu1 }
 0x12c   : > { %1314 = vst [vmem:[%s1640_s19 + $0x78] sm:$0xff] %v1298_v13   ;;  %v1293_v17 = vpack.c.bf16 %v848_v16, %v845_v9 }
 0x12d   : > { %632 = vst [vmem:[%s1628_s15 + $0xe8] sm:$0xff] %v592_v15 }
 0x12e   : > { %1313 = vst [vmem:[%s1640_s19 + $0x70] sm:$0xff] %v1293_v17  }
 0x12f PF: > { %s16_s18 = sadd.s32 1, %s1505_s18  }
 0x130   : > { %p13_p4 = scmp.ge.s32.totalorder %s16_s18, 4  }
 0x132   :  { %15 = sbr.rel (!%p13_p4) target bundleno = 1 (0x1), region = 78 }

// kernel: graphsage_forward.11
= control target key start
LH: loop header
LB: loop body
LE: loop exit
PB: predicated region body
PF: predicated region fallthrough
CT: control target
= control target key end

     0   :  { %s1953_s15 = smov 0   ;;  %s1955_s16 = smov 0   ;;  %s2233_s0 = inlined_call_operand.vmem [shape: s8[512,512], index: 0, kind: input, shape index: {}]   ;;  %s2234_s1 = inlined_call_operand.vmem [shape: bf16[512,128], index: 1, kind: input, shape index: {}]   ;;  %s2235_s2 = inlined_call_operand.vmem [shape: f32[512,128], index: 2, kind: input, shape index: {}]   ;;  %s2236_s3 = inlined_call_operand.vmem [shape: f32[512,1], index: 3, kind: input, shape index: {}]   ;;  %s2237_s4 = inlined_call_operand.vmem [shape: f32[512,128], index: 4, kind: output, shape index: {}]  }
   0x1   :  { %s1957_s17 = smov 0  }
   0x2 LB: > { %s26_s18 = sadd.s32 1, %s1921_s16  ;;  %p1575_p0 = scmp.ge.s32.totalorder %s1925_s17, 1  ;;  %s1925_s17 = sphi %s1957_s17, %s14_s17   ;;  %s1921_s16 = sphi %s1955_s16, %s2239_s16   ;;  %s1917_s15 = sphi %s1953_s15, %s2238_s15  }
   0x3   : > { %p28_p1 = scmp.ge.s32.totalorder %s26_s18, 2  ;;  %p216_p2 = scmp.lt.s32.totalorder %s1925_s17, 3 }
   0x5   : > { %s2241_s18 = smov (%p28_p1, %s26_s18), 0  ;;  %p217_p3 = pnand %p1575_p0, %p216_p2 }
   0x6   : > { %s1576_s29 = sshll.u32 (!%p217_p3), %s1917_s15, 3  ;;  %s1579_s20 = sshll.u32 (!%p217_p3), %s1917_s15, 5 }
   0x7   : > { %220 = sbr.rel (%p217_p3) target bundleno = 375 (0x177), region = 36  ;;  %p264_p4 = scmp.lt.s32.totalorder (!%p217_p3), %s1576_s29, 15 }
   0x8   : > { %p281_p5 = scmp.lt.s32.totalorder (!%p217_p3), %s1579_s20, 63 }
   0xc   : > { %v1871_v0 = vld [vmem:[%s2234_s1 + $0x78] sm:$0xff]   ;;  %v1927_v4 = vmov 0   ;;  %v1875_v5 = vld [vmem:[%s2234_s1 + $0x70] sm:$0xff]   ;;  %v1879_v9 = vld [vmem:[%s2234_s1 + $0x68] sm:$0xff]   ;;  %s2243_s29 = smov (!%p264_p4, %s1576_s29), 15  ;;  %s2245_s20 = smov (!%p281_p5, %s1579_s20), 63 }
   0xd   : > { %v1872_v1 = vld [vmem:[%s2234_s1 + $0xf8] sm:$0xff]   ;;  %1620 = vmatprep.subr.bf16.mxu0 %v1871_v0  ;;  %1869 = vset.pattern.permute.xlu0 %v1927_v4  ;;  %v1876_v6 = vld [vmem:[%s2234_s1 + $0xf0] sm:$0xff]   ;;  %v1880_v10 = vld [vmem:[%s2234_s1 + $0xe8] sm:$0xff]   ;;  %s1619_s5 = sshll.u32 %s2243_s29, 5  ;;  %s2079_s23 = sshll.u32 %s2245_s20, 3 }
   0xe   : > { %v1873_v2 = vld [vmem:[%s2234_s1 + $0x38] sm:$0xff]   ;;  %1732 = vmatprep.subr.bf16.mxu1 %v1872_v1  ;;  %1870 = vset.pattern.permute.xlu1 %v1927_v4  ;;  %v1877_v7 = vld [vmem:[%s2234_s1 + $0x30] sm:$0xff]   ;;  %v1881_v11 = vld [vmem:[%s2234_s1 + $0x28] sm:$0xff]   ;;  %s2068_s29 = scalar_lea.vmem %s2233_s0, %s1619_s5  ;;  %s2086_s26 = scalar_lea.vmem %s2236_s3, %s2079_s23 }
   0xf   : > { %v1874_v3 = vld [vmem:[%s2234_s1 + $0xb8] sm:$0xff]   ;;  %1621 = vmatpush3.bf16.msra.mxu0 %v1873_v2  ;;  %v1878_v8 = vld [vmem:[%s2234_s1 + $0xb0] sm:$0xff]   ;;  %v1882_v12 = vld [vmem:[%s2234_s1 + $0xa8] sm:$0xff]   ;;  %s2152_s15 = scalar_lea.vmem %s2235_s2, %s2079_s23  ;;  %s2159_s5 = scalar_lea.vmem %s2237_s4, %s2079_s23 }
  0x10   : > { %1733 = vmatpush3.bf16.msra.mxu1 %v1874_v3  ;;  %1622 = vmatprep.subr.bf16.mxu0 %v1875_v5  ;;  %v1883_v13 = vld [vmem:[%s2234_s1 + $0x60] sm:$0xff]   ;;  %v1887_v17 = vld [vmem:[%s2234_s1 + $0x58] sm:$0xff]   ;;  %v1891_v21 = vld [vmem:[%s2234_s1 + $0x50] sm:$0xff]  }
  0x11   : > { %1734 = vmatprep.subr.bf16.mxu1 %v1876_v6  ;;  %v1884_v14 = vld [vmem:[%s2234_s1 + $0xe0] sm:$0xff]   ;;  %v1888_v18 = vld [vmem:[%s2234_s1 + $0xd8] sm:$0xff]   ;;  %v1892_v22 = vld [vmem:[%s2234_s1 + $0xd0] sm:$0xff]  }
  0x12   : > { %v1885_v15 = vld [vmem:[%s2234_s1 + $0x20] sm:$0xff]   ;;  %v1889_v19 = vld [vmem:[%s2234_s1 + $0x18] sm:$0xff]   ;;  %v1893_v23 = vld [vmem:[%s2234_s1 + $0x10] sm:$0xff]  }
  0x13   : > { %1623 = vmatpush3.bf16.msra.mxu0 %v1877_v7  ;;  %v1886_v16 = vld [vmem:[%s2234_s1 + $0xa0] sm:$0xff]   ;;  %v1890_v20 = vld [vmem:[%s2234_s1 + $0x98] sm:$0xff]   ;;  %v1894_v24 = vld [vmem:[%s2234_s1 + $0x90] sm:$0xff]  }
  0x14   : > { %1735 = vmatpush3.bf16.msra.mxu1 %v1878_v8  ;;  %1624 = vmatprep.subr.bf16.mxu0 %v1879_v9  ;;  %v1895_v25 = vld [vmem:[%s2234_s1 + $0x48] sm:$0xff]   ;;  %v1899_v29 = vld [vmem:[%s2234_s1 + $0x40] sm:$0xff]   ;;  %v338_v34 = vld [vmem:[%s2068_s29 + $0x18] sm:$0xff] }
  0x15   : > { %1736 = vmatprep.subr.bf16.mxu1 %v1880_v10  ;;  %v1896_v26 = vld [vmem:[%s2234_s1 + $0xc8] sm:$0xff]   ;;  %v1900_v30 = vld [vmem:[%s2234_s1 + $0xc0] sm:$0xff]   ;;  %v370_v38 = vunpack.c.l.s8.bf16 %v338_v34  ;;  %v374_v39 = vunpack.c.h.s8.bf16 %v338_v34  ;;  %v337_v40 = vld [vmem:[%s2068_s29 + $0x10] sm:$0xff] }
  0x16   : > { %v1897_v27 = vld [vmem:[%s2234_s1 + $0x8] sm:$0xff]   ;;  %v1901_v31 = vld [vmem:[%s2234_s1] sm:$0xff]   ;;  %v369_v42 = vunpack.c.l.s8.bf16 %v337_v40  ;;  %v342_v44 = vld [vmem:[%s2068_s29 + $0x38] sm:$0xff]  ;;  %v373_v48 = vunpack.c.h.s8.bf16 %v337_v40 }
  0x17   : > { %1625 = vmatpush3.bf16.msra.mxu0 %v1881_v11  ;;  %v1898_v28 = vld [vmem:[%s2234_s1 + $0x88] sm:$0xff]   ;;  %v1902_v32 = vld [vmem:[%s2234_s1 + $0x80] sm:$0xff]   ;;  %912 = vmatprep.mubr.bf16.mxu1 %v370_v38  ;;  %v1142_v46 = vld [vmem:[%s2086_s26 + $0x10] sm:$0xff]  ;;  %v378_v51 = vunpack.c.l.s8.bf16 %v342_v44  ;;  %v382_v61 = vunpack.c.h.s8.bf16 %v342_v44 }
  0x18   : > { %1737 = vmatpush3.bf16.msra.mxu1 %v1882_v12  ;;  %1626 = vmatprep.subr.bf16.mxu0 %v1883_v13  ;;  %v336_v33 = vld [vmem:[%s2068_s29 + $0x8] sm:$0xff]  ;;  %v335_v35 = vld [vmem:[%s2068_s29] sm:$0xff]  ;;  %v1143_v52 = vld [vmem:[%s2086_s26 + $0x18] sm:$0xff] }
  0x19   : > { %1738 = vmatprep.subr.bf16.mxu1 %v1884_v14  ;;  %v368_v36 = vunpack.c.l.s8.bf16 %v336_v33  ;;  %v372_v37 = vunpack.c.h.s8.bf16 %v336_v33  ;;  %v367_v41 = vunpack.c.l.s8.bf16 %v335_v35  ;;  %v340_v43 = vld [vmem:[%s2068_s29 + $0x28] sm:$0xff]  ;;  %v1140_v45 = vld [vmem:[%s2086_s26] sm:$0xff]  ;;  %v371_v47 = vunpack.c.h.s8.bf16 %v335_v35  ;;  %1184 = vperm.xlu1 %1870, %v1142_v46   ;;  %v341_v55 = vld [vmem:[%s2068_s29 + $0x30] sm:$0xff] }
  0x1a   : > { %1174 = vperm.xlu0 %1869, %v1140_v45   ;;  %v1141_v49 = vld [vmem:[%s2086_s26 + $0x8] sm:$0xff]  ;;  %v376_v50 = vunpack.c.l.s8.bf16 %v340_v43  ;;  %v1144_v53 = vld [vmem:[%s2086_s26 + $0x20] sm:$0xff]  ;;  %v377_v58 = vunpack.c.l.s8.bf16 %v341_v55  ;;  %v1146_v59 = vld [vmem:[%s2086_s26 + $0x30] sm:$0xff]  ;;  %v380_v60 = vunpack.c.h.s8.bf16 %v340_v43  ;;  %v381_v4 = vunpack.c.h.s8.bf16 %v341_v55 }
  0x1b   : > { %1627 = vmatpush3.bf16.msra.mxu0 %v1885_v15  ;;  %751 = vmatprep.mubr.bf16.mxu0 %v368_v36  ;;  %v339_v54 = vld [vmem:[%s2068_s29 + $0x20] sm:$0xff]  ;;  %v1145_v56 = vld [vmem:[%s2086_s26 + $0x28] sm:$0xff]  ;;  %v1147_v62 = vld [vmem:[%s2086_s26 + $0x38] sm:$0xff] }
  0x1c   : > { %1739 = vmatpush3.bf16.msra.mxu1 %v1886_v16  ;;  %1628 = vmatprep.subr.bf16.mxu0 %v1887_v17  ;;  %v375_v57 = vunpack.c.l.s8.bf16 %v339_v54  ;;  %v1148_v63 = vld [vmem:[%s2086_s26 + $0x40] sm:$0xff]  ;;  %v344_v0 = vld [vmem:[%s2068_s29 + $0x48] sm:$0xff]  ;;  %v346_v1 = vld [vmem:[%s2068_s29 + $0x58] sm:$0xff]  ;;  %v379_v3 = vunpack.c.h.s8.bf16 %v339_v54 }
  0x1d   : > { %1740 = vmatprep.subr.bf16.mxu1 %v1888_v18  ;;  %1189 = vperm.xlu1 %1870, %v1143_v52   ;;  %v1149_v2 = vld [vmem:[%s2086_s26 + $0x48] sm:$0xff]  ;;  %v1150_v5 = vld [vmem:[%s2086_s26 + $0x50] sm:$0xff]  ;;  %v384_v6 = vunpack.c.l.s8.bf16 %v344_v0  ;;  %v386_v7 = vunpack.c.l.s8.bf16 %v346_v1  ;;  %v1151_v8 = vld [vmem:[%s2086_s26 + $0x58] sm:$0xff]  ;;  %v388_v16 = vunpack.c.h.s8.bf16 %v344_v0  ;;  %v390_v17 = vunpack.c.h.s8.bf16 %v346_v1 }
  0x1e   : > { %1179 = vperm.xlu0 %1869, %v1141_v49   ;;  %v1152_v9 = vld [vmem:[%s2086_s26 + $0x60] sm:$0xff]  ;;  %v345_v11 = vld [vmem:[%s2068_s29 + $0x50] sm:$0xff]  ;;  %v1153_v12 = vld [vmem:[%s2086_s26 + $0x68] sm:$0xff] }
  0x1f   : > { %1629 = vmatpush3.bf16.msra.mxu0 %v1889_v19  ;;  %v343_v10 = vld [vmem:[%s2068_s29 + $0x40] sm:$0xff]  ;;  %v385_v14 = vunpack.c.l.s8.bf16 %v345_v11  ;;  %v1154_v15 = vld [vmem:[%s2086_s26 + $0x70] sm:$0xff]  ;;  %v1155_v18 = vld [vmem:[%s2086_s26 + $0x78] sm:$0xff] }
  0x20   : > { %1741 = vmatpush3.bf16.msra.mxu1 %v1890_v20  ;;  %1630 = vmatprep.subr.bf16.mxu0 %v1891_v21  ;;  %v383_v13 = vunpack.c.l.s8.bf16 %v343_v10  ;;  %v1156_v19 = vld [vmem:[%s2086_s26 + $0x80] sm:$0xff]  ;;  %v348_v20 = vld [vmem:[%s2068_s29 + $0x68] sm:$0xff]  ;;  %v350_v21 = vld [vmem:[%s2068_s29 + $0x78] sm:$0xff] }
  0x21   : > { %1742 = vmatprep.subr.bf16.mxu1 %v1892_v22  ;;  %1199 = vperm.xlu1 %1870, %v1145_v56   ;;  %v1157_v22 = vld [vmem:[%s2086_s26 + $0x88] sm:$0xff]  ;;  %v1162_v35 = vld [vmem:[%s2086_s26 + $0xb0] sm:$0xff]  ;;  %v396_v36 = vunpack.c.h.s8.bf16 %v348_v20  ;;  %v1163_v38 = vld [vmem:[%s2086_s26 + $0xb8] sm:$0xff] }
  0x22   : > { %1194 = vperm.xlu0 %1869, %v1144_v53   ;;  %v352_v40 = vld [vmem:[%s2068_s29 + $0x88] sm:$0xff]  ;;  %v1166_v45 = vld [vmem:[%s2086_s26 + $0xd0] sm:$0xff]  ;;  %v1168_v49 = vld [vmem:[%s2086_s26 + $0xe0] sm:$0xff] }
  0x23   : > { %1631 = vmatpush3.bf16.msra.mxu0 %v1893_v23  ;;  %v387_v23 = vunpack.c.h.s8.bf16 %v343_v10  ;;  %v400_v46 = vunpack.c.l.s8.bf16 %v352_v40  ;;  %v1169_v52 = vld [vmem:[%s2086_s26 + $0xe8] sm:$0xff]  ;;  %v1170_v55 = vld [vmem:[%s2086_s26 + $0xf0] sm:$0xff]  ;;  %v404_v56 = vunpack.c.h.s8.bf16 %v352_v40  ;;  %v355_v1 = vld [vmem:[%s2068_s29 + $0xa0] sm:$0xff] }
  0x24   : > { %1743 = vmatpush3.bf16.msra.mxu1 %v1894_v24  ;;  %1632 = vmatprep.subr.bf16.mxu0 %v1895_v25  ;;  %v389_v24 = vunpack.c.h.s8.bf16 %v345_v11  ;;  %v1158_v25 = vld [vmem:[%s2086_s26 + $0x90] sm:$0xff] }
  0x25   : > { %1744 = vmatprep.subr.bf16.mxu1 %v1896_v26  ;;  %1209 = vperm.xlu1 %1870, %v1147_v62   ;;  %v392_v26 = vunpack.c.l.s8.bf16 %v348_v20  ;;  %v366_v20 = vld [vmem:[%s2068_s29 + $0xf8] sm:$0xff] }
  0x26   : > { %1204 = vperm.xlu0 %1869, %v1146_v59   ;;  %v356_v59 = vld [vmem:[%s2068_s29 + $0xa8] sm:$0xff] }
  0x27   : > { %1633 = vmatpush3.bf16.msra.mxu0 %v1897_v27  ;;  %v394_v27 = vunpack.c.l.s8.bf16 %v350_v21 }
  0x28   : > { %1745 = vmatpush3.bf16.msra.mxu1 %v1898_v28  ;;  %1634 = vmatprep.subr.bf16.mxu0 %v1899_v29  ;;  %v1159_v28 = vld [vmem:[%s2086_s26 + $0x98] sm:$0xff]  ;;  %v1160_v29 = vld [vmem:[%s2086_s26 + $0xa0] sm:$0xff] }
  0x29   : > { %1746 = vmatprep.subr.bf16.mxu1 %v1900_v30  ;;  %1219 = vperm.xlu1 %1870, %v1149_v2   ;;  %v347_v30 = vld [vmem:[%s2068_s29 + $0x60] sm:$0xff]  ;;  %v357_v2 = vld [vmem:[%s2068_s29 + $0xb0] sm:$0xff] }
  0x2a   : > { %1214 = vperm.xlu0 %1869, %v1148_v63   ;;  %v391_v33 = vunpack.c.l.s8.bf16 %v347_v30  ;;  %v395_v43 = vunpack.c.h.s8.bf16 %v347_v30  ;;  %v408_v63 = vunpack.c.l.s8.bf16 %v356_v59  ;;  %v413_v10 = vunpack.c.h.s8.bf16 %v357_v2 }
  0x2b   : > { %1635 = vmatpush3.bf16.msra.mxu0 %v1901_v31  ;;  %v349_v31 = vld [vmem:[%s2068_s29 + $0x70] sm:$0xff]  ;;  %v430_v30 = vunpack.c.h.s8.bf16 %v366_v20 }
  0x2c   : > { %1747 = vmatpush3.bf16.msra.mxu1 %v1902_v32  ;;  %v1161_v32 = vld [vmem:[%s2086_s26 + $0xa8] sm:$0xff]  ;;  %v393_v34 = vunpack.c.l.s8.bf16 %v349_v31  ;;  %v397_v44 = vunpack.c.h.s8.bf16 %v349_v31 }
  0x2d   : > { %1229 = vperm.xlu1 %1870, %v1151_v8   ;;  %v362_v8 = vld [vmem:[%s2068_s29 + $0xd8] sm:$0xff] }
  0x2e   : > { %752 = vmatmul.mubr.bf16.vlgmr.msra.gmra.mxu0 %v367_v41  ;;  %1224 = vperm.xlu0 %1869, %v1150_v5   ;;  %v354_v41 = vld [vmem:[%s2068_s29 + $0x98] sm:$0xff]  ;;  %v412_v5 = vunpack.c.h.s8.bf16 %v356_v59 }
  0x2f   : > { %913 = vmatmul.mubr.bf16.vlgmr.msra.gmra.mxu1 %v369_v42  ;;  %759 = vmatprep.mubr.bf16.mxu0 %v372_v37  ;;  %v398_v37 = vunpack.c.h.s8.bf16 %v350_v21  ;;  %v1165_v42 = vld [vmem:[%s2086_s26 + $0xc8] sm:$0xff] }
  0x30   : > { %920 = vmatprep.mubr.bf16.mxu1 %v374_v39  ;;  %v1164_v39 = vld [vmem:[%s2086_s26 + $0xc0] sm:$0xff] }
  0x31   : > { %1239 = vperm.xlu1 %1870, %v1153_v12   ;;  %v418_v12 = vunpack.c.l.s8.bf16 %v362_v8 }
  0x32   : > { %1234 = vperm.xlu0 %1869, %v1152_v9   ;;  %v411_v9 = vunpack.c.h.s8.bf16 %v355_v1 }
  0x35   : > { %1249 = vperm.xlu1 %1870, %v1155_v18   ;;  %v422_v18 = vunpack.c.h.s8.bf16 %v362_v8 }
  0x36   : > { %760 = vmatmul.mubr.bf16.gmra.mxu0 %v371_v47  ;;  %1244 = vperm.xlu0 %1869, %v1154_v15   ;;  %v402_v47 = vunpack.c.l.s8.bf16 %v354_v41 }
  0x37   : > { %921 = vmatmul.mubr.bf16.gmra.mxu1 %v373_v48  ;;  %767 = vmatprep.mubr.bf16.mxu0 %v376_v50  ;;  %v1167_v48 = vld [vmem:[%s2086_s26 + $0xd8] sm:$0xff]  ;;  %v351_v50 = vld [vmem:[%s2068_s29 + $0x80] sm:$0xff] }
  0x38   : > { %928 = vmatprep.mubr.bf16.mxu1 %v378_v51  ;;  %v353_v51 = vld [vmem:[%s2068_s29 + $0x90] sm:$0xff]  ;;  %v399_v53 = vunpack.c.l.s8.bf16 %v351_v50 }
  0x39   : > { %1259 = vperm.xlu1 %1870, %v1157_v22   ;;  %v401_v54 = vunpack.c.l.s8.bf16 %v353_v51  ;;  %v405_v62 = vunpack.c.h.s8.bf16 %v353_v51 }
  0x3a   : > { %1254 = vperm.xlu0 %1869, %v1156_v19   ;;  %v364_v19 = vld [vmem:[%s2068_s29 + $0xe8] sm:$0xff] }
  0x3d   : > { %1269 = vperm.xlu1 %1870, %v1159_v28  }
  0x3e   : > { %768 = vmatmul.mubr.bf16.gmra.mxu0 %v375_v57  ;;  %1264 = vperm.xlu0 %1869, %v1158_v25   ;;  %v406_v57 = vunpack.c.h.s8.bf16 %v354_v41  ;;  %v363_v25 = vld [vmem:[%s2068_s29 + $0xe0] sm:$0xff] }
  0x3f   : > { %929 = vmatmul.mubr.bf16.gmra.mxu1 %v377_v58  ;;  %775 = vmatprep.mubr.bf16.mxu0 %v380_v60  ;;  %v1171_v58 = vld [vmem:[%s2086_s26 + $0xf8] sm:$0xff]  ;;  %v427_v31 = vunpack.c.h.s8.bf16 %v363_v25 }
  0x40   : > { %936 = vmatprep.mubr.bf16.mxu1 %v382_v61  ;;  %v358_v60 = vld [vmem:[%s2068_s29 + $0xb8] sm:$0xff]  ;;  %v403_v61 = vunpack.c.h.s8.bf16 %v351_v50 }
  0x41   : > { %1279 = vperm.xlu1 %1870, %v1161_v32   ;;  %v410_v0 = vunpack.c.l.s8.bf16 %v358_v60 }
  0x42   : > { %1274 = vperm.xlu0 %1869, %v1160_v29   ;;  %v428_v29 = vunpack.c.h.s8.bf16 %v364_v19 }
  0x45   : > { %1289 = vperm.xlu1 %1870, %v1163_v38  }
  0x46   : > { %776 = vmatmul.mubr.bf16.gmra.mxu0 %v379_v3  ;;  %1284 = vperm.xlu0 %1869, %v1162_v35   ;;  %v407_v3 = vunpack.c.l.s8.bf16 %v355_v1  ;;  %v1366_v1 = vld [vmem:[%s2152_s15 + $0x10] sm:$0xff] }
  0x47   : > { %937 = vmatmul.mubr.bf16.gmra.mxu1 %v381_v4  ;;  %783 = vmatprep.mubr.bf16.mxu0 %v384_v6  ;;  %v409_v4 = vunpack.c.l.s8.bf16 %v357_v2  ;;  %v414_v6 = vunpack.c.h.s8.bf16 %v358_v60 }
  0x48   : > { %944 = vmatprep.mubr.bf16.mxu1 %v386_v7  ;;  %v360_v7 = vld [vmem:[%s2068_s29 + $0xc8] sm:$0xff] }
  0x49   : > { %1299 = vperm.xlu1 %1870, %v1165_v42   ;;  %v416_v11 = vunpack.c.l.s8.bf16 %v360_v7 }
  0x4a   : > { %1294 = vperm.xlu0 %1869, %v1164_v39  }
  0x4d   : > { %1309 = vperm.xlu1 %1870, %v1167_v48  }
  0x4e   : > { %784 = vmatmul.mubr.bf16.gmra.mxu0 %v383_v13  ;;  %1304 = vperm.xlu0 %1869, %v1166_v45   ;;  %v359_v13 = vld [vmem:[%s2068_s29 + $0xc0] sm:$0xff] }
  0x4f   : > { %945 = vmatmul.mubr.bf16.gmra.mxu1 %v385_v14  ;;  %791 = vmatprep.mubr.bf16.mxu0 %v388_v16  ;;  %v361_v14 = vld [vmem:[%s2068_s29 + $0xd0] sm:$0xff]  ;;  %v415_v15 = vunpack.c.l.s8.bf16 %v359_v13  ;;  %v419_v21 = vunpack.c.h.s8.bf16 %v359_v13 }
  0x50   : > { %952 = vmatprep.mubr.bf16.mxu1 %v390_v17  ;;  %v417_v16 = vunpack.c.l.s8.bf16 %v361_v14  ;;  %v420_v17 = vunpack.c.h.s8.bf16 %v360_v7  ;;  %v421_v22 = vunpack.c.h.s8.bf16 %v361_v14 }
  0x51   : > { %1319 = vperm.xlu1 %1870, %v1169_v52  }
  0x52   : > { %1314 = vperm.xlu0 %1869, %v1168_v49  }
  0x55   : > { %1329 = vperm.xlu1 %1870, %v1171_v58  }
  0x56   : > { %792 = vmatmul.mubr.bf16.gmra.mxu0 %v387_v23  ;;  %1324 = vperm.xlu0 %1869, %v1170_v55   ;;  %v424_v23 = vunpack.c.l.s8.bf16 %v364_v19 }
  0x57   : > { %953 = vmatmul.mubr.bf16.gmra.mxu1 %v389_v24  ;;  %799 = vmatprep.mubr.bf16.mxu0 %v392_v26  ;;  %v426_v24 = vunpack.c.l.s8.bf16 %v366_v20  ;;  %v365_v26 = vld [vmem:[%s2068_s29 + $0xf0] sm:$0xff] }
  0x58   : > { %960 = vmatprep.mubr.bf16.mxu1 %v394_v27  ;;  %v423_v27 = vunpack.c.l.s8.bf16 %v363_v25  ;;  %v425_v28 = vunpack.c.l.s8.bf16 %v365_v26  ;;  %v429_v32 = vunpack.c.h.s8.bf16 %v365_v26 }
  0x5e   : > { %800 = vmatmul.mubr.bf16.gmra.mxu0 %v391_v33 }
  0x5f   : > { %961 = vmatmul.mubr.bf16.gmra.mxu1 %v393_v34  ;;  %807 = vmatprep.mubr.bf16.mxu0 %v396_v36 }
  0x60   : > { %968 = vmatprep.mubr.bf16.mxu1 %v398_v37 }
  0x66   : > { %808 = vmatmul.mubr.bf16.gmra.mxu0 %v395_v43  ;;  %v1364_v43 = vld [vmem:[%s2152_s15] sm:$0xff] }
  0x67   : > { %969 = vmatmul.mubr.bf16.gmra.mxu1 %v397_v44  ;;  %815 = vmatprep.mubr.bf16.mxu0 %v400_v46 }
  0x68   : > { %976 = vmatprep.mubr.bf16.mxu1 %v402_v47 }
  0x6e   : > { %816 = vmatmul.mubr.bf16.gmra.mxu0 %v399_v53 }
  0x6f   : > { %977 = vmatmul.mubr.bf16.gmra.mxu1 %v401_v54  ;;  %823 = vmatprep.mubr.bf16.mxu0 %v404_v56  ;;  %v1365_v54 = vld [vmem:[%s2152_s15 + $0x8] sm:$0xff] }
  0x70   : > { %984 = vmatprep.mubr.bf16.mxu1 %v406_v57 }
  0x76   : > { %824 = vmatmul.mubr.bf16.gmra.mxu0 %v403_v61 }
  0x77   : > { %985 = vmatmul.mubr.bf16.gmra.mxu1 %v405_v62  ;;  %831 = vmatprep.mubr.bf16.mxu0 %v408_v63 }
  0x78   : > { %992 = vmatprep.mubr.bf16.mxu1 %v410_v0 }
  0x7e   : > { %832 = vmatmul.mubr.bf16.gmra.mxu0 %v407_v3 }
  0x7f   : > { %993 = vmatmul.mubr.bf16.gmra.mxu1 %v409_v4  ;;  %839 = vmatprep.mubr.bf16.mxu0 %v412_v5 }
  0x80   : > { %1000 = vmatprep.mubr.bf16.mxu1 %v414_v6 }
  0x86   : > { %840 = vmatmul.mubr.bf16.gmra.mxu0 %v411_v9 }
  0x87   : > { %1001 = vmatmul.mubr.bf16.gmra.mxu1 %v413_v10  ;;  %847 = vmatprep.mubr.bf16.mxu0 %v416_v11 }
  0x88   : > { %1008 = vmatprep.mubr.bf16.mxu1 %v418_v12  ;;  %v1367_v12 = vld [vmem:[%s2152_s15 + $0x18] sm:$0xff] }
  0x8e   : > { %848 = vmatmul.mubr.bf16.gmra.mxu0 %v415_v15 }
  0x8f   : > { %1009 = vmatmul.mubr.bf16.gmra.mxu1 %v417_v16  ;;  %855 = vmatprep.mubr.bf16.mxu0 %v420_v17 }
  0x90   : > { %1016 = vmatprep.mubr.bf16.mxu1 %v422_v18 }
  0x94   : > { %v1185_v57 = vpop.permute.xlu1 %1184 }
  0x95   : > { %v1175_v35 = vpop.permute.xlu0 %1174 }
  0x96   : > { %856 = vmatmul.mubr.bf16.gmra.mxu0 %v419_v21 }
  0x97   : > { %1017 = vmatmul.mubr.bf16.gmra.mxu1 %v421_v22  ;;  %863 = vmatprep.mubr.bf16.mxu0 %v424_v23  ;;  %v1368_v23 = vld [vmem:[%s2152_s15 + $0x20] sm:$0xff] }
  0x98   : > { %1024 = vmatprep.mubr.bf16.mxu1 %v426_v24  ;;  %v1190_v10 = vpop.permute.xlu1 %1189 }
  0x99   : > { %v1180_v49 = vpop.permute.xlu0 %1179 }
  0x9d   : > { %v1195_v21 = vpop.permute.xlu0 %1194 }
  0x9e   : > { %864 = vmatmul.mubr.bf16.gmra.mxu0 %v423_v27 }
  0x9f   : > { %1025 = vmatmul.mubr.bf16.gmra.mxu1 %v425_v28  ;;  %871 = vmatprep.mubr.bf16.mxu0 %v428_v29 }
  0xa0   : > { %1032 = vmatprep.mubr.bf16.mxu1 %v430_v30 }
  0xa6   : > { %872 = vmatmul.mubr.bf16.gmra.mxu0 %v427_v31  ;;  %v1200_v31 = vpop.permute.xlu1 %1199 }
  0xa7   : > { %1033 = vmatmul.mubr.bf16.gmra.mxu1 %v429_v32 }
  0xee   : > { %v1636_v33 = vpop.f32.mrf.mxu0 }
  0xef   : > { %v1748_v34 = vpop.f32.mrf.mxu1 }
  0xf0   : > { %v1637_v36 = vpop.f32.mrf.mxu0 }
  0xf1   : > { %v1749_v37 = vpop.f32.mrf.mxu1  ;;  %v1638_v38 = vadd.f32 %v1637_v36, %v1636_v33 }
  0xf2   : > { %v1750_v39 = vadd.f32 %v1749_v37, %v1748_v34  ;;  %v1639_v40 = vpop.f32.mrf.mxu0  ;;  %v1369_v34 = vld [vmem:[%s2152_s15 + $0x28] sm:$0xff] }
  0xf3   : > { %v1751_v41 = vpop.f32.mrf.mxu1 }
  0xf4   : > { %v915_v42 = vadd.f32 %v1750_v39, %v1638_v38  ;;  %v1640_v44 = vpop.f32.mrf.mxu0 }
  0xf5   : > { %v1752_v45 = vpop.f32.mrf.mxu1  ;;  %v1641_v47 = vadd.f32 %v1640_v44, %v1639_v40 }
  0xf6   : > { %v1332_v46 = vmul.f32 %v1175_v35, %v915_v42  ;;  %v1753_v48 = vadd.f32 %v1752_v45, %v1751_v41  ;;  %v1642_v50 = vpop.f32.mrf.mxu0  ;;  %v1205_v42 = vpop.permute.xlu0 %1204  ;;  %v1370_v45 = vld [vmem:[%s2152_s15 + $0x30] sm:$0xff] }
  0xf7   : > { %v1754_v51 = vpop.f32.mrf.mxu1 }
  0xf8   : > { %v1396_v52 = vadd.f32 %v1364_v43, %v1332_v46  ;;  %v918_v53 = vadd.f32 %v1753_v48, %v1641_v47  ;;  %v1643_v55 = vpop.f32.mrf.mxu0 }
  0xf9   : > { %v1755_v56 = vpop.f32.mrf.mxu1  ;;  %v1644_v59 = vadd.f32 %v1643_v55, %v1642_v50 }
  0xfa   : > { %1428 = vst [vmem:[%s2159_s5] sm:$0xff] %v1396_v52  ;;  %v1333_v58 = vmul.f32 %v1180_v49, %v918_v53  ;;  %v1756_v60 = vadd.f32 %v1755_v56, %v1754_v51  ;;  %v1645_v61 = vpop.f32.mrf.mxu0  ;;  %v1210_v53 = vpop.permute.xlu1 %1209  ;;  %v1371_v56 = vld [vmem:[%s2152_s15 + $0x38] sm:$0xff] }
  0xfb   : > { %v1757_v62 = vpop.f32.mrf.mxu1 }
  0xfc   : > { %v1397_v63 = vadd.f32 %v1365_v54, %v1333_v58  ;;  %v923_v0 = vadd.f32 %v1756_v60, %v1644_v59  ;;  %v1646_v2 = vpop.f32.mrf.mxu0 }
  0xfd   : > { %v1758_v3 = vpop.f32.mrf.mxu1  ;;  %v1647_v5 = vadd.f32 %v1646_v2, %v1645_v61 }
  0xfe   : > { %1429 = vst [vmem:[%s2159_s5 + $0x8] sm:$0xff] %v1397_v63  ;;  %v1334_v4 = vmul.f32 %v1185_v57, %v923_v0  ;;  %v1759_v6 = vadd.f32 %v1758_v3, %v1757_v62  ;;  %v1648_v7 = vpop.f32.mrf.mxu0  ;;  %v1215_v0 = vpop.permute.xlu0 %1214  ;;  %v1372_v3 = vld [vmem:[%s2152_s15 + $0x40] sm:$0xff] }
  0xff   : > { %v1760_v8 = vpop.f32.mrf.mxu1 }
 0x100   : > { %v1398_v9 = vadd.f32 %v1366_v1, %v1334_v4  ;;  %v926_v11 = vadd.f32 %v1759_v6, %v1647_v5  ;;  %v1649_v13 = vpop.f32.mrf.mxu0 }
 0x101   : > { %v1761_v14 = vpop.f32.mrf.mxu1  ;;  %v1650_v16 = vadd.f32 %v1649_v13, %v1648_v7 }
 0x102   : > { %1430 = vst [vmem:[%s2159_s5 + $0x10] sm:$0xff] %v1398_v9  ;;  %v1335_v15 = vmul.f32 %v1190_v10, %v926_v11  ;;  %v1762_v17 = vadd.f32 %v1761_v14, %v1760_v8  ;;  %v1651_v18 = vpop.f32.mrf.mxu0  ;;  %v1220_v11 = vpop.permute.xlu1 %1219  ;;  %v1373_v14 = vld [vmem:[%s2152_s15 + $0x48] sm:$0xff] }
 0x103   : > { %v1763_v19 = vpop.f32.mrf.mxu1 }
 0x104   : > { %v1399_v20 = vadd.f32 %v1367_v12, %v1335_v15  ;;  %v931_v22 = vadd.f32 %v1762_v17, %v1650_v16  ;;  %v1652_v24 = vpop.f32.mrf.mxu0 }
 0x105   : > { %v1764_v25 = vpop.f32.mrf.mxu1  ;;  %v1653_v27 = vadd.f32 %v1652_v24, %v1651_v18 }
 0x106   : > { %1431 = vst [vmem:[%s2159_s5 + $0x18] sm:$0xff] %v1399_v20  ;;  %v1336_v26 = vmul.f32 %v1195_v21, %v931_v22  ;;  %v1765_v28 = vadd.f32 %v1764_v25, %v1763_v19  ;;  %v1654_v29 = vpop.f32.mrf.mxu0  ;;  %v1225_v22 = vpop.permute.xlu0 %1224  ;;  %v1374_v25 = vld [vmem:[%s2152_s15 + $0x50] sm:$0xff] }
 0x107   : > { %v1766_v30 = vpop.f32.mrf.mxu1 }
 0x108   : > { %v1400_v32 = vadd.f32 %v1368_v23, %v1336_v26  ;;  %v934_v33 = vadd.f32 %v1765_v28, %v1653_v27  ;;  %v1655_v35 = vpop.f32.mrf.mxu0 }
 0x109   : > { %v1767_v36 = vpop.f32.mrf.mxu1  ;;  %v1656_v38 = vadd.f32 %v1655_v35, %v1654_v29 }
 0x10a   : > { %1432 = vst [vmem:[%s2159_s5 + $0x20] sm:$0xff] %v1400_v32  ;;  %v1337_v37 = vmul.f32 %v1200_v31, %v934_v33  ;;  %v1768_v39 = vadd.f32 %v1767_v36, %v1766_v30  ;;  %v1657_v40 = vpop.f32.mrf.mxu0  ;;  %v1230_v33 = vpop.permute.xlu1 %1229  ;;  %v1375_v36 = vld [vmem:[%s2152_s15 + $0x58] sm:$0xff] }
 0x10b   : > { %v1769_v41 = vpop.f32.mrf.mxu1 }
 0x10c   : > { %v1401_v43 = vadd.f32 %v1369_v34, %v1337_v37  ;;  %v939_v44 = vadd.f32 %v1768_v39, %v1656_v38  ;;  %v1658_v46 = vpop.f32.mrf.mxu0 }
 0x10d   : > { %v1770_v47 = vpop.f32.mrf.mxu1  ;;  %v1659_v49 = vadd.f32 %v1658_v46, %v1657_v40 }
 0x10e   : > { %1433 = vst [vmem:[%s2159_s5 + $0x28] sm:$0xff] %v1401_v43  ;;  %v1338_v48 = vmul.f32 %v1205_v42, %v939_v44  ;;  %v1771_v50 = vadd.f32 %v1770_v47, %v1769_v41  ;;  %v1660_v51 = vpop.f32.mrf.mxu0  ;;  %v1235_v44 = vpop.permute.xlu0 %1234  ;;  %v1376_v47 = vld [vmem:[%s2152_s15 + $0x60] sm:$0xff] }
 0x10f   : > { %v1772_v52 = vpop.f32.mrf.mxu1 }
 0x110   : > { %v1402_v54 = vadd.f32 %v1370_v45, %v1338_v48  ;;  %v942_v55 = vadd.f32 %v1771_v50, %v1659_v49  ;;  %v1661_v57 = vpop.f32.mrf.mxu0 }
 0x111   : > { %v1773_v58 = vpop.f32.mrf.mxu1  ;;  %v1662_v60 = vadd.f32 %v1661_v57, %v1660_v51 }
 0x112   : > { %1434 = vst [vmem:[%s2159_s5 + $0x30] sm:$0xff] %v1402_v54  ;;  %v1339_v59 = vmul.f32 %v1210_v53, %v942_v55  ;;  %v1774_v61 = vadd.f32 %v1773_v58, %v1772_v52  ;;  %v1663_v62 = vpop.f32.mrf.mxu0  ;;  %v1240_v55 = vpop.permute.xlu1 %1239  ;;  %v1377_v58 = vld [vmem:[%s2152_s15 + $0x68] sm:$0xff] }
 0x113   : > { %v1775_v63 = vpop.f32.mrf.mxu1 }
 0x114   : > { %v1403_v1 = vadd.f32 %v1371_v56, %v1339_v59  ;;  %v947_v2 = vadd.f32 %v1774_v61, %v1662_v60  ;;  %v1664_v4 = vpop.f32.mrf.mxu0 }
 0x115   : > { %v1776_v5 = vpop.f32.mrf.mxu1  ;;  %v1665_v7 = vadd.f32 %v1664_v4, %v1663_v62 }
 0x116   : > { %1435 = vst [vmem:[%s2159_s5 + $0x38] sm:$0xff] %v1403_v1  ;;  %v1340_v6 = vmul.f32 %v1215_v0, %v947_v2  ;;  %v1777_v8 = vadd.f32 %v1776_v5, %v1775_v63  ;;  %v1666_v9 = vpop.f32.mrf.mxu0  ;;  %v1245_v2 = vpop.permute.xlu0 %1244  ;;  %v1378_v5 = vld [vmem:[%s2152_s15 + $0x70] sm:$0xff] }
 0x117   : > { %v1778_v10 = vpop.f32.mrf.mxu1 }
 0x118   : > { %v1404_v12 = vadd.f32 %v1372_v3, %v1340_v6  ;;  %v950_v13 = vadd.f32 %v1777_v8, %v1665_v7  ;;  %v1667_v15 = vpop.f32.mrf.mxu0 }
 0x119   : > { %v1779_v16 = vpop.f32.mrf.mxu1  ;;  %v1668_v18 = vadd.f32 %v1667_v15, %v1666_v9 }
 0x11a   : > { %1436 = vst [vmem:[%s2159_s5 + $0x40] sm:$0xff] %v1404_v12  ;;  %v1341_v17 = vmul.f32 %v1220_v11, %v950_v13  ;;  %v1780_v19 = vadd.f32 %v1779_v16, %v1778_v10  ;;  %v1669_v20 = vpop.f32.mrf.mxu0  ;;  %v1250_v13 = vpop.permute.xlu1 %1249  ;;  %v1379_v16 = vld [vmem:[%s2152_s15 + $0x78] sm:$0xff] }
 0x11b   : > { %v1781_v21 = vpop.f32.mrf.mxu1 }
 0x11c   : > { %v1405_v23 = vadd.f32 %v1373_v14, %v1341_v17  ;;  %v955_v24 = vadd.f32 %v1780_v19, %v1668_v18  ;;  %v1670_v26 = vpop.f32.mrf.mxu0 }
 0x11d   : > { %v1782_v27 = vpop.f32.mrf.mxu1  ;;  %v1671_v29 = vadd.f32 %v1670_v26, %v1669_v20 }
 0x11e   : > { %1437 = vst [vmem:[%s2159_s5 + $0x48] sm:$0xff] %v1405_v23  ;;  %v1342_v28 = vmul.f32 %v1225_v22, %v955_v24  ;;  %v1783_v30 = vadd.f32 %v1782_v27, %v1781_v21  ;;  %v1672_v31 = vpop.f32.mrf.mxu0  ;;  %v1255_v24 = vpop.permute.xlu0 %1254  ;;  %v1380_v27 = vld [vmem:[%s2152_s15 + $0x80] sm:$0xff] }
 0x11f   : > { %v1784_v32 = vpop.f32.mrf.mxu1 }
 0x120   : > { %v1406_v34 = vadd.f32 %v1374_v25, %v1342_v28  ;;  %v958_v35 = vadd.f32 %v1783_v30, %v1671_v29  ;;  %v1673_v37 = vpop.f32.mrf.mxu0 }
 0x121   : > { %v1785_v38 = vpop.f32.mrf.mxu1  ;;  %v1674_v40 = vadd.f32 %v1673_v37, %v1672_v31 }
 0x122   : > { %1438 = vst [vmem:[%s2159_s5 + $0x50] sm:$0xff] %v1406_v34  ;;  %v1343_v39 = vmul.f32 %v1230_v33, %v958_v35  ;;  %v1786_v41 = vadd.f32 %v1785_v38, %v1784_v32  ;;  %v1675_v42 = vpop.f32.mrf.mxu0  ;;  %v1260_v35 = vpop.permute.xlu1 %1259  ;;  %v1381_v38 = vld [vmem:[%s2152_s15 + $0x88] sm:$0xff] }
 0x123   : > { %v1787_v43 = vpop.f32.mrf.mxu1 }
 0x124   : > { %v1407_v45 = vadd.f32 %v1375_v36, %v1343_v39  ;;  %v963_v46 = vadd.f32 %v1786_v41, %v1674_v40  ;;  %v1676_v48 = vpop.f32.mrf.mxu0 }
 0x125   : > { %v1788_v49 = vpop.f32.mrf.mxu1  ;;  %v1677_v51 = vadd.f32 %v1676_v48, %v1675_v42 }
 0x126   : > { %1439 = vst [vmem:[%s2159_s5 + $0x58] sm:$0xff] %v1407_v45  ;;  %v1344_v50 = vmul.f32 %v1235_v44, %v963_v46  ;;  %v1789_v52 = vadd.f32 %v1788_v49, %v1787_v43  ;;  %v1678_v53 = vpop.f32.mrf.mxu0  ;;  %v1265_v46 = vpop.permute.xlu0 %1264  ;;  %v1382_v49 = vld [vmem:[%s2152_s15 + $0x90] sm:$0xff] }
 0x127   : > { %v1790_v54 = vpop.f32.mrf.mxu1 }
 0x128   : > { %v1408_v56 = vadd.f32 %v1376_v47, %v1344_v50  ;;  %v966_v57 = vadd.f32 %v1789_v52, %v1677_v51  ;;  %v1679_v59 = vpop.f32.mrf.mxu0 }
 0x129   : > { %v1791_v60 = vpop.f32.mrf.mxu1  ;;  %v1680_v62 = vadd.f32 %v1679_v59, %v1678_v53 }
 0x12a   : > { %1440 = vst [vmem:[%s2159_s5 + $0x60] sm:$0xff] %v1408_v56  ;;  %v1345_v61 = vmul.f32 %v1240_v55, %v966_v57  ;;  %v1792_v63 = vadd.f32 %v1791_v60, %v1790_v54  ;;  %v1681_v0 = vpop.f32.mrf.mxu0  ;;  %v1270_v57 = vpop.permute.xlu1 %1269  ;;  %v1383_v60 = vld [vmem:[%s2152_s15 + $0x98] sm:$0xff] }
 0x12b   : > { %v1793_v1 = vpop.f32.mrf.mxu1 }
 0x12c   : > { %v1409_v3 = vadd.f32 %v1377_v58, %v1345_v61  ;;  %v971_v4 = vadd.f32 %v1792_v63, %v1680_v62  ;;  %v1682_v6 = vpop.f32.mrf.mxu0 }
 0x12d   : > { %v1794_v7 = vpop.f32.mrf.mxu1  ;;  %v1683_v9 = vadd.f32 %v1682_v6, %v1681_v0 }
 0x12e   : > { %1441 = vst [vmem:[%s2159_s5 + $0x68] sm:$0xff] %v1409_v3  ;;  %v1346_v8 = vmul.f32 %v1245_v2, %v971_v4  ;;  %v1795_v10 = vadd.f32 %v1794_v7, %v1793_v1  ;;  %v1684_v11 = vpop.f32.mrf.mxu0  ;;  %v1275_v4 = vpop.permute.xlu0 %1274  ;;  %v1384_v7 = vld [vmem:[%s2152_s15 + $0xa0] sm:$0xff] }
 0x12f   : > { %v1796_v12 = vpop.f32.mrf.mxu1 }
 0x130   : > { %v1410_v14 = vadd.f32 %v1378_v5, %v1346_v8  ;;  %v974_v15 = vadd.f32 %v1795_v10, %v1683_v9  ;;  %v1685_v17 = vpop.f32.mrf.mxu0 }
 0x131   : > { %v1797_v18 = vpop.f32.mrf.mxu1  ;;  %v1686_v20 = vadd.f32 %v1685_v17, %v1684_v11 }
 0x132   : > { %1442 = vst [vmem:[%s2159_s5 + $0x70] sm:$0xff] %v1410_v14  ;;  %v1347_v19 = vmul.f32 %v1250_v13, %v974_v15  ;;  %v1798_v21 = vadd.f32 %v1797_v18, %v1796_v12  ;;  %v1687_v22 = vpop.f32.mrf.mxu0  ;;  %v1280_v15 = vpop.permute.xlu1 %1279  ;;  %v1385_v18 = vld [vmem:[%s2152_s15 + $0xa8] sm:$0xff] }
 0x133   : > { %v1799_v23 = vpop.f32.mrf.mxu1 }
 0x134   : > { %v1411_v25 = vadd.f32 %v1379_v16, %v1347_v19  ;;  %v979_v26 = vadd.f32 %v1798_v21, %v1686_v20  ;;  %v1688_v28 = vpop.f32.mrf.mxu0 }
 0x135   : > { %v1800_v29 = vpop.f32.mrf.mxu1  ;;  %v1689_v31 = vadd.f32 %v1688_v28, %v1687_v22 }
 0x136   : > { %1443 = vst [vmem:[%s2159_s5 + $0x78] sm:$0xff] %v1411_v25  ;;  %v1348_v30 = vmul.f32 %v1255_v24, %v979_v26  ;;  %v1801_v32 = vadd.f32 %v1800_v29, %v1799_v23  ;;  %v1690_v33 = vpop.f32.mrf.mxu0  ;;  %v1285_v26 = vpop.permute.xlu0 %1284  ;;  %v1386_v29 = vld [vmem:[%s2152_s15 + $0xb0] sm:$0xff] }
 0x137   : > { %v1802_v34 = vpop.f32.mrf.mxu1 }
 0x138   : > { %v1412_v36 = vadd.f32 %v1380_v27, %v1348_v30  ;;  %v982_v37 = vadd.f32 %v1801_v32, %v1689_v31  ;;  %v1691_v39 = vpop.f32.mrf.mxu0 }
 0x139   : > { %v1803_v40 = vpop.f32.mrf.mxu1  ;;  %v1692_v42 = vadd.f32 %v1691_v39, %v1690_v33 }
 0x13a   : > { %1444 = vst [vmem:[%s2159_s5 + $0x80] sm:$0xff] %v1412_v36  ;;  %v1349_v41 = vmul.f32 %v1260_v35, %v982_v37  ;;  %v1804_v43 = vadd.f32 %v1803_v40, %v1802_v34  ;;  %v1693_v44 = vpop.f32.mrf.mxu0  ;;  %v1290_v37 = vpop.permute.xlu1 %1289  ;;  %v1387_v40 = vld [vmem:[%s2152_s15 + $0xb8] sm:$0xff] }
 0x13b   : > { %v1805_v45 = vpop.f32.mrf.mxu1 }
 0x13c   : > { %v1413_v47 = vadd.f32 %v1381_v38, %v1349_v41  ;;  %v987_v48 = vadd.f32 %v1804_v43, %v1692_v42  ;;  %v1694_v50 = vpop.f32.mrf.mxu0 }
 0x13d   : > { %v1806_v51 = vpop.f32.mrf.mxu1  ;;  %v1695_v53 = vadd.f32 %v1694_v50, %v1693_v44 }
 0x13e   : > { %1445 = vst [vmem:[%s2159_s5 + $0x88] sm:$0xff] %v1413_v47  ;;  %v1350_v52 = vmul.f32 %v1265_v46, %v987_v48  ;;  %v1807_v54 = vadd.f32 %v1806_v51, %v1805_v45  ;;  %v1696_v55 = vpop.f32.mrf.mxu0  ;;  %v1295_v48 = vpop.permute.xlu0 %1294  ;;  %v1388_v51 = vld [vmem:[%s2152_s15 + $0xc0] sm:$0xff] }
 0x13f   : > { %v1808_v56 = vpop.f32.mrf.mxu1 }
 0x140   : > { %v1414_v58 = vadd.f32 %v1382_v49, %v1350_v52  ;;  %v990_v59 = vadd.f32 %v1807_v54, %v1695_v53  ;;  %v1697_v61 = vpop.f32.mrf.mxu0 }
 0x141   : > { %v1809_v62 = vpop.f32.mrf.mxu1  ;;  %v1698_v0 = vadd.f32 %v1697_v61, %v1696_v55 }
 0x142   : > { %1446 = vst [vmem:[%s2159_s5 + $0x90] sm:$0xff] %v1414_v58  ;;  %v1351_v63 = vmul.f32 %v1270_v57, %v990_v59  ;;  %v1810_v1 = vadd.f32 %v1809_v62, %v1808_v56  ;;  %v1699_v2 = vpop.f32.mrf.mxu0  ;;  %v1300_v59 = vpop.permute.xlu1 %1299  ;;  %v1389_v62 = vld [vmem:[%s2152_s15 + $0xc8] sm:$0xff] }
 0x143   : > { %v1811_v3 = vpop.f32.mrf.mxu1 }
 0x144   : > { %v1415_v5 = vadd.f32 %v1383_v60, %v1351_v63  ;;  %v995_v6 = vadd.f32 %v1810_v1, %v1698_v0  ;;  %v1700_v8 = vpop.f32.mrf.mxu0 }
 0x145   : > { %v1812_v9 = vpop.f32.mrf.mxu1  ;;  %v1701_v11 = vadd.f32 %v1700_v8, %v1699_v2 }
 0x146   : > { %1447 = vst [vmem:[%s2159_s5 + $0x98] sm:$0xff] %v1415_v5  ;;  %v1352_v10 = vmul.f32 %v1275_v4, %v995_v6  ;;  %v1813_v12 = vadd.f32 %v1812_v9, %v1811_v3  ;;  %v1702_v13 = vpop.f32.mrf.mxu0  ;;  %v1305_v6 = vpop.permute.xlu0 %1304  ;;  %v1390_v9 = vld [vmem:[%s2152_s15 + $0xd0] sm:$0xff] }
 0x147   : > { %v1814_v14 = vpop.f32.mrf.mxu1 }
 0x148   : > { %v1416_v16 = vadd.f32 %v1384_v7, %v1352_v10  ;;  %v998_v17 = vadd.f32 %v1813_v12, %v1701_v11  ;;  %v1703_v19 = vpop.f32.mrf.mxu0 }
 0x149   : > { %v1815_v20 = vpop.f32.mrf.mxu1  ;;  %v1704_v22 = vadd.f32 %v1703_v19, %v1702_v13 }
 0x14a   : > { %1448 = vst [vmem:[%s2159_s5 + $0xa0] sm:$0xff] %v1416_v16  ;;  %v1353_v21 = vmul.f32 %v1280_v15, %v998_v17  ;;  %v1816_v23 = vadd.f32 %v1815_v20, %v1814_v14  ;;  %v1705_v24 = vpop.f32.mrf.mxu0  ;;  %v1310_v17 = vpop.permute.xlu1 %1309  ;;  %v1391_v20 = vld [vmem:[%s2152_s15 + $0xd8] sm:$0xff] }
 0x14b   : > { %v1817_v25 = vpop.f32.mrf.mxu1 }
 0x14c   : > { %v1417_v27 = vadd.f32 %v1385_v18, %v1353_v21  ;;  %v1003_v28 = vadd.f32 %v1816_v23, %v1704_v22  ;;  %v1706_v30 = vpop.f32.mrf.mxu0 }
 0x14d   : > { %v1818_v31 = vpop.f32.mrf.mxu1  ;;  %v1707_v33 = vadd.f32 %v1706_v30, %v1705_v24 }
 0x14e   : > { %1449 = vst [vmem:[%s2159_s5 + $0xa8] sm:$0xff] %v1417_v27  ;;  %v1354_v32 = vmul.f32 %v1285_v26, %v1003_v28  ;;  %v1819_v34 = vadd.f32 %v1818_v31, %v1817_v25  ;;  %v1708_v35 = vpop.f32.mrf.mxu0  ;;  %v1315_v28 = vpop.permute.xlu0 %1314  ;;  %v1392_v31 = vld [vmem:[%s2152_s15 + $0xe0] sm:$0xff] }
 0x14f   : > { %v1820_v36 = vpop.f32.mrf.mxu1 }
 0x150   : > { %v1418_v38 = vadd.f32 %v1386_v29, %v1354_v32  ;;  %v1006_v39 = vadd.f32 %v1819_v34, %v1707_v33  ;;  %v1709_v41 = vpop.f32.mrf.mxu0 }
 0x151   : > { %v1821_v42 = vpop.f32.mrf.mxu1  ;;  %v1710_v44 = vadd.f32 %v1709_v41, %v1708_v35 }
 0x152   : > { %1450 = vst [vmem:[%s2159_s5 + $0xb0] sm:$0xff] %v1418_v38  ;;  %v1355_v43 = vmul.f32 %v1290_v37, %v1006_v39  ;;  %v1822_v45 = vadd.f32 %v1821_v42, %v1820_v36  ;;  %v1711_v46 = vpop.f32.mrf.mxu0  ;;  %v1320_v39 = vpop.permute.xlu1 %1319  ;;  %v1393_v42 = vld [vmem:[%s2152_s15 + $0xe8] sm:$0xff] }
 0x153   : > { %v1823_v47 = vpop.f32.mrf.mxu1 }
 0x154   : > { %v1419_v49 = vadd.f32 %v1387_v40, %v1355_v43  ;;  %v1011_v50 = vadd.f32 %v1822_v45, %v1710_v44  ;;  %v1712_v52 = vpop.f32.mrf.mxu0 }
 0x155   : > { %v1824_v53 = vpop.f32.mrf.mxu1  ;;  %v1713_v55 = vadd.f32 %v1712_v52, %v1711_v46 }
 0x156   : > { %1451 = vst [vmem:[%s2159_s5 + $0xb8] sm:$0xff] %v1419_v49  ;;  %v1356_v54 = vmul.f32 %v1295_v48, %v1011_v50  ;;  %v1825_v56 = vadd.f32 %v1824_v53, %v1823_v47  ;;  %v1714_v57 = vpop.f32.mrf.mxu0  ;;  %v1325_v50 = vpop.permute.xlu0 %1324  ;;  %v1394_v53 = vld [vmem:[%s2152_s15 + $0xf0] sm:$0xff] }
 0x157   : > { %v1826_v58 = vpop.f32.mrf.mxu1 }
 0x158   : > { %v1420_v60 = vadd.f32 %v1388_v51, %v1356_v54  ;;  %v1014_v61 = vadd.f32 %v1825_v56, %v1713_v55  ;;  %v1715_v63 = vpop.f32.mrf.mxu0 }
 0x159   : > { %v1827_v0 = vpop.f32.mrf.mxu1  ;;  %v1716_v2 = vadd.f32 %v1715_v63, %v1714_v57 }
 0x15a   : > { %1452 = vst [vmem:[%s2159_s5 + $0xc0] sm:$0xff] %v1420_v60  ;;  %v1357_v1 = vmul.f32 %v1300_v59, %v1014_v61  ;;  %v1828_v3 = vadd.f32 %v1827_v0, %v1826_v58  ;;  %v1717_v4 = vpop.f32.mrf.mxu0  ;;  %v1330_v61 = vpop.permute.xlu1 %1329 }
 0x15b   : > { %v1829_v5 = vpop.f32.mrf.mxu1 }
 0x15c   : > { %v1421_v7 = vadd.f32 %v1389_v62, %v1357_v1  ;;  %v1019_v8 = vadd.f32 %v1828_v3, %v1716_v2  ;;  %v1718_v10 = vpop.f32.mrf.mxu0  ;;  %v1395_v62 = vld [vmem:[%s2152_s15 + $0xf8] sm:$0xff] }
 0x15d   : > { %v1830_v11 = vpop.f32.mrf.mxu1  ;;  %v1719_v13 = vadd.f32 %v1718_v10, %v1717_v4 }
 0x15e   : > { %1453 = vst [vmem:[%s2159_s5 + $0xc8] sm:$0xff] %v1421_v7  ;;  %v1358_v12 = vmul.f32 %v1305_v6, %v1019_v8  ;;  %v1831_v14 = vadd.f32 %v1830_v11, %v1829_v5  ;;  %v1720_v15 = vpop.f32.mrf.mxu0 }
 0x15f   : > { %v1832_v16 = vpop.f32.mrf.mxu1 }
 0x160   : > { %v1422_v18 = vadd.f32 %v1390_v9, %v1358_v12  ;;  %v1022_v19 = vadd.f32 %v1831_v14, %v1719_v13  ;;  %v1721_v21 = vpop.f32.mrf.mxu0 }
 0x161   : > { %v1833_v22 = vpop.f32.mrf.mxu1  ;;  %v1722_v24 = vadd.f32 %v1721_v21, %v1720_v15 }
 0x162   : > { %1454 = vst [vmem:[%s2159_s5 + $0xd0] sm:$0xff] %v1422_v18  ;;  %v1359_v23 = vmul.f32 %v1310_v17, %v1022_v19  ;;  %v1834_v25 = vadd.f32 %v1833_v22, %v1832_v16  ;;  %v1723_v26 = vpop.f32.mrf.mxu0 }
 0x163   : > { %v1835_v27 = vpop.f32.mrf.mxu1 }
 0x164   : > { %v1423_v29 = vadd.f32 %v1391_v20, %v1359_v23  ;;  %v1027_v30 = vadd.f32 %v1834_v25, %v1722_v24  ;;  %v1724_v32 = vpop.f32.mrf.mxu0 }
 0x165   : > { %v1836_v33 = vpop.f32.mrf.mxu1  ;;  %v1725_v35 = vadd.f32 %v1724_v32, %v1723_v26 }
 0x166   : > { %1455 = vst [vmem:[%s2159_s5 + $0xd8] sm:$0xff] %v1423_v29  ;;  %v1360_v34 = vmul.f32 %v1315_v28, %v1027_v30  ;;  %v1837_v36 = vadd.f32 %v1836_v33, %v1835_v27  ;;  %v1726_v37 = vpop.f32.mrf.mxu0 }
 0x167   : > { %v1838_v38 = vpop.f32.mrf.mxu1 }
 0x168   : > { %v1424_v40 = vadd.f32 %v1392_v31, %v1360_v34  ;;  %v1030_v41 = vadd.f32 %v1837_v36, %v1725_v35  ;;  %v1727_v43 = vpop.f32.mrf.mxu0 }
 0x169   : > { %v1839_v44 = vpop.f32.mrf.mxu1  ;;  %v1728_v46 = vadd.f32 %v1727_v43, %v1726_v37 }
 0x16a   : > { %1456 = vst [vmem:[%s2159_s5 + $0xe0] sm:$0xff] %v1424_v40  ;;  %v1361_v45 = vmul.f32 %v1320_v39, %v1030_v41  ;;  %v1840_v47 = vadd.f32 %v1839_v44, %v1838_v38  ;;  %v1729_v48 = vpop.f32.mrf.mxu0 }
 0x16b   : > { %v1841_v49 = vpop.f32.mrf.mxu1 }
 0x16c   : > { %v1425_v51 = vadd.f32 %v1393_v42, %v1361_v45  ;;  %v1035_v52 = vadd.f32 %v1840_v47, %v1728_v46  ;;  %v1730_v54 = vpop.f32.mrf.mxu0 }
 0x16d   : > { %v1842_v55 = vpop.f32.mrf.mxu1  ;;  %v1731_v57 = vadd.f32 %v1730_v54, %v1729_v48 }
 0x16e   : > { %1457 = vst [vmem:[%s2159_s5 + $0xe8] sm:$0xff] %v1425_v51  ;;  %v1362_v56 = vmul.f32 %v1325_v50, %v1035_v52  ;;  %v1843_v58 = vadd.f32 %v1842_v55, %v1841_v49 }
 0x170   : > { %v1426_v59 = vadd.f32 %v1394_v53, %v1362_v56  ;;  %v1038_v60 = vadd.f32 %v1843_v58, %v1731_v57 }
 0x172   : > { %1458 = vst [vmem:[%s2159_s5 + $0xf0] sm:$0xff] %v1426_v59  ;;  %v1363_v63 = vmul.f32 %v1330_v61, %v1038_v60 }
 0x174   : > { %v1427_v0 = vadd.f32 %v1395_v62, %v1363_v63 }
 0x176   : > { %1459 = vst [vmem:[%s2159_s5 + $0xf8] sm:$0xff] %v1427_v0 }
 0x177 PF: > { %s14_s17 = sadd.s32 1, %s1925_s17   ;;  %s2238_s15 = smov %s1921_s16 }
 0x178   : > { %p11_p6 = scmp.ge.s32.totalorder %s14_s17, 4   ;;  %s2239_s16 = smov %s2241_s18 }
 0x17a   :  { %13 = sbr.rel (!%p11_p6) target bundleno = 2 (0x2), region = 83 }

// kernel: graphsage_forward.7
= control target key start
LH: loop header
LB: loop body
LE: loop exit
PB: predicated region body
PF: predicated region fallthrough
CT: control target
= control target key end

     0   :  { %s2272_s15 = smov 0   ;;  %s2274_s16 = smov 0   ;;  %s2539_s0 = inlined_call_operand.vmem [shape: s8[512,512], index: 0, kind: input, shape index: {}]   ;;  %s2540_s1 = inlined_call_operand.vmem [shape: bf16[512,128], index: 1, kind: input, shape index: {}]   ;;  %s2541_s2 = inlined_call_operand.vmem [shape: f32[512,128], index: 2, kind: input, shape index: {}]   ;;  %s2542_s3 = inlined_call_operand.vmem [shape: f32[512,1], index: 3, kind: input, shape index: {}]   ;;  %s2543_s4 = inlined_call_operand.vmem [shape: bf16[512,128], index: 4, kind: output, shape index: {}]  }
   0x1   :  { %s2276_s17 = smov 0  }
   0x2 LB: > { %s26_s18 = sadd.s32 1, %s2240_s16  ;;  %p1735_p0 = scmp.ge.s32.totalorder %s2244_s17, 1  ;;  %s2244_s17 = sphi %s2276_s17, %s14_s17   ;;  %s2240_s16 = sphi %s2274_s16, %s2545_s16   ;;  %s2236_s15 = sphi %s2272_s15, %s2544_s15  }
   0x3   : > { %p28_p1 = scmp.ge.s32.totalorder %s26_s18, 2  ;;  %p216_p2 = scmp.lt.s32.totalorder %s2244_s17, 3 }
   0x5   : > { %s2547_s18 = smov (%p28_p1, %s26_s18), 0  ;;  %p217_p3 = pnand %p1735_p0, %p216_p2 }
   0x6   : > { %s1736_s29 = sshll.u32 (!%p217_p3), %s2236_s15, 3  ;;  %s1739_s20 = sshll.u32 (!%p217_p3), %s2236_s15, 5 }
   0x7   : > { %220 = sbr.rel (%p217_p3) target bundleno = 379 (0x17b), region = 36  ;;  %p264_p4 = scmp.lt.s32.totalorder (!%p217_p3), %s1736_s29, 15 }
   0x8   : > { %p281_p5 = scmp.lt.s32.totalorder (!%p217_p3), %s1739_s20, 63 }
   0xc   : > { %v2190_v0 = vld [vmem:[%s2540_s1 + $0x78] sm:$0xff]   ;;  %v2246_v4 = vmov 0   ;;  %v2194_v5 = vld [vmem:[%s2540_s1 + $0x70] sm:$0xff]   ;;  %v2198_v9 = vld [vmem:[%s2540_s1 + $0x68] sm:$0xff]   ;;  %s2549_s29 = smov (!%p264_p4, %s1736_s29), 15  ;;  %s2551_s20 = smov (!%p281_p5, %s1739_s20), 63 }
   0xd   : > { %v2191_v1 = vld [vmem:[%s2540_s1 + $0xf8] sm:$0xff]   ;;  %1939 = vmatprep.subr.bf16.mxu0 %v2190_v0  ;;  %2188 = vset.pattern.permute.xlu0 %v2246_v4  ;;  %v2195_v6 = vld [vmem:[%s2540_s1 + $0xf0] sm:$0xff]   ;;  %v2199_v10 = vld [vmem:[%s2540_s1 + $0xe8] sm:$0xff]   ;;  %s1811_s5 = sshll.u32 %s2549_s29, 5  ;;  %s1740_s23 = sshll.u32 %s2551_s20, 3 }
   0xe   : > { %v2192_v2 = vld [vmem:[%s2540_s1 + $0x38] sm:$0xff]   ;;  %2051 = vmatprep.subr.bf16.mxu1 %v2191_v1  ;;  %2189 = vset.pattern.permute.xlu1 %v2246_v4  ;;  %v2196_v7 = vld [vmem:[%s2540_s1 + $0x30] sm:$0xff]   ;;  %v2200_v11 = vld [vmem:[%s2540_s1 + $0x28] sm:$0xff]   ;;  %s2389_s13 = scalar_lea.vmem %s2539_s0, %s1811_s5  ;;  %s2407_s26 = scalar_lea.vmem %s2542_s3, %s1740_s23 }
   0xf   : > { %v2193_v3 = vld [vmem:[%s2540_s1 + $0xb8] sm:$0xff]   ;;  %1940 = vmatpush3.bf16.msra.mxu0 %v2192_v2  ;;  %v2197_v8 = vld [vmem:[%s2540_s1 + $0xb0] sm:$0xff]   ;;  %v2201_v12 = vld [vmem:[%s2540_s1 + $0xa8] sm:$0xff]   ;;  %s2474_s28 = scalar_lea.vmem %s2541_s2, %s1740_s23  ;;  %s1744_s30 = sshll.u32 %s2551_s20, 2 }
  0x10   : > { %2052 = vmatpush3.bf16.msra.mxu1 %v2193_v3  ;;  %1941 = vmatprep.subr.bf16.mxu0 %v2194_v5  ;;  %v2202_v13 = vld [vmem:[%s2540_s1 + $0x60] sm:$0xff]   ;;  %v2206_v17 = vld [vmem:[%s2540_s1 + $0x58] sm:$0xff]   ;;  %v2210_v21 = vld [vmem:[%s2540_s1 + $0x50] sm:$0xff]   ;;  %s2483_s7 = scalar_lea.vmem %s2543_s4, %s1744_s30 }
  0x11   : > { %2053 = vmatprep.subr.bf16.mxu1 %v2195_v6  ;;  %v2203_v14 = vld [vmem:[%s2540_s1 + $0xe0] sm:$0xff]   ;;  %v2207_v18 = vld [vmem:[%s2540_s1 + $0xd8] sm:$0xff]   ;;  %v2211_v22 = vld [vmem:[%s2540_s1 + $0xd0] sm:$0xff]  }
  0x12   : > { %v2204_v15 = vld [vmem:[%s2540_s1 + $0x20] sm:$0xff]   ;;  %v2208_v19 = vld [vmem:[%s2540_s1 + $0x18] sm:$0xff]   ;;  %v2212_v23 = vld [vmem:[%s2540_s1 + $0x10] sm:$0xff]  }
  0x13   : > { %1942 = vmatpush3.bf16.msra.mxu0 %v2196_v7  ;;  %v2205_v16 = vld [vmem:[%s2540_s1 + $0xa0] sm:$0xff]   ;;  %v2209_v20 = vld [vmem:[%s2540_s1 + $0x98] sm:$0xff]   ;;  %v2213_v24 = vld [vmem:[%s2540_s1 + $0x90] sm:$0xff]  }
  0x14   : > { %2054 = vmatpush3.bf16.msra.mxu1 %v2197_v8  ;;  %1943 = vmatprep.subr.bf16.mxu0 %v2198_v9  ;;  %v2214_v25 = vld [vmem:[%s2540_s1 + $0x48] sm:$0xff]   ;;  %v2218_v29 = vld [vmem:[%s2540_s1 + $0x40] sm:$0xff]   ;;  %v338_v34 = vld [vmem:[%s2389_s13 + $0x18] sm:$0xff] }
  0x15   : > { %2055 = vmatprep.subr.bf16.mxu1 %v2199_v10  ;;  %v2215_v26 = vld [vmem:[%s2540_s1 + $0xc8] sm:$0xff]   ;;  %v2219_v30 = vld [vmem:[%s2540_s1 + $0xc0] sm:$0xff]   ;;  %v370_v38 = vunpack.c.l.s8.bf16 %v338_v34  ;;  %v374_v39 = vunpack.c.h.s8.bf16 %v338_v34  ;;  %v337_v40 = vld [vmem:[%s2389_s13 + $0x10] sm:$0xff] }
  0x16   : > { %v2216_v27 = vld [vmem:[%s2540_s1 + $0x8] sm:$0xff]   ;;  %v2220_v31 = vld [vmem:[%s2540_s1] sm:$0xff]   ;;  %v369_v42 = vunpack.c.l.s8.bf16 %v337_v40  ;;  %v342_v44 = vld [vmem:[%s2389_s13 + $0x38] sm:$0xff]  ;;  %v373_v48 = vunpack.c.h.s8.bf16 %v337_v40 }
  0x17   : > { %1944 = vmatpush3.bf16.msra.mxu0 %v2200_v11  ;;  %v2217_v28 = vld [vmem:[%s2540_s1 + $0x88] sm:$0xff]   ;;  %v2221_v32 = vld [vmem:[%s2540_s1 + $0x80] sm:$0xff]   ;;  %912 = vmatprep.mubr.bf16.mxu1 %v370_v38  ;;  %v1142_v46 = vld [vmem:[%s2407_s26 + $0x10] sm:$0xff]  ;;  %v378_v51 = vunpack.c.l.s8.bf16 %v342_v44  ;;  %v382_v61 = vunpack.c.h.s8.bf16 %v342_v44 }
  0x18   : > { %2056 = vmatpush3.bf16.msra.mxu1 %v2201_v12  ;;  %1945 = vmatprep.subr.bf16.mxu0 %v2202_v13  ;;  %v336_v33 = vld [vmem:[%s2389_s13 + $0x8] sm:$0xff]  ;;  %v335_v35 = vld [vmem:[%s2389_s13] sm:$0xff]  ;;  %v1143_v52 = vld [vmem:[%s2407_s26 + $0x18] sm:$0xff] }
  0x19   : > { %2057 = vmatprep.subr.bf16.mxu1 %v2203_v14  ;;  %v368_v36 = vunpack.c.l.s8.bf16 %v336_v33  ;;  %v372_v37 = vunpack.c.h.s8.bf16 %v336_v33  ;;  %v367_v41 = vunpack.c.l.s8.bf16 %v335_v35  ;;  %v340_v43 = vld [vmem:[%s2389_s13 + $0x28] sm:$0xff]  ;;  %v1140_v45 = vld [vmem:[%s2407_s26] sm:$0xff]  ;;  %v371_v47 = vunpack.c.h.s8.bf16 %v335_v35  ;;  %1184 = vperm.xlu1 %2189, %v1142_v46   ;;  %v341_v55 = vld [vmem:[%s2389_s13 + $0x30] sm:$0xff] }
  0x1a   : > { %1174 = vperm.xlu0 %2188, %v1140_v45   ;;  %v1141_v49 = vld [vmem:[%s2407_s26 + $0x8] sm:$0xff]  ;;  %v376_v50 = vunpack.c.l.s8.bf16 %v340_v43  ;;  %v1144_v53 = vld [vmem:[%s2407_s26 + $0x20] sm:$0xff]  ;;  %v377_v58 = vunpack.c.l.s8.bf16 %v341_v55  ;;  %v1146_v59 = vld [vmem:[%s2407_s26 + $0x30] sm:$0xff]  ;;  %v380_v60 = vunpack.c.h.s8.bf16 %v340_v43  ;;  %v381_v4 = vunpack.c.h.s8.bf16 %v341_v55 }
  0x1b   : > { %1946 = vmatpush3.bf16.msra.mxu0 %v2204_v15  ;;  %751 = vmatprep.mubr.bf16.mxu0 %v368_v36  ;;  %v339_v54 = vld [vmem:[%s2389_s13 + $0x20] sm:$0xff]  ;;  %v1145_v56 = vld [vmem:[%s2407_s26 + $0x28] sm:$0xff]  ;;  %v1147_v62 = vld [vmem:[%s2407_s26 + $0x38] sm:$0xff] }
  0x1c   : > { %2058 = vmatpush3.bf16.msra.mxu1 %v2205_v16  ;;  %1947 = vmatprep.subr.bf16.mxu0 %v2206_v17  ;;  %v375_v57 = vunpack.c.l.s8.bf16 %v339_v54  ;;  %v1148_v63 = vld [vmem:[%s2407_s26 + $0x40] sm:$0xff]  ;;  %v344_v0 = vld [vmem:[%s2389_s13 + $0x48] sm:$0xff]  ;;  %v346_v1 = vld [vmem:[%s2389_s13 + $0x58] sm:$0xff]  ;;  %v379_v3 = vunpack.c.h.s8.bf16 %v339_v54 }
  0x1d   : > { %2059 = vmatprep.subr.bf16.mxu1 %v2207_v18  ;;  %1189 = vperm.xlu1 %2189, %v1143_v52   ;;  %v1149_v2 = vld [vmem:[%s2407_s26 + $0x48] sm:$0xff]  ;;  %v1150_v5 = vld [vmem:[%s2407_s26 + $0x50] sm:$0xff]  ;;  %v384_v6 = vunpack.c.l.s8.bf16 %v344_v0  ;;  %v386_v7 = vunpack.c.l.s8.bf16 %v346_v1  ;;  %v1151_v8 = vld [vmem:[%s2407_s26 + $0x58] sm:$0xff]  ;;  %v388_v16 = vunpack.c.h.s8.bf16 %v344_v0  ;;  %v390_v17 = vunpack.c.h.s8.bf16 %v346_v1 }
  0x1e   : > { %1179 = vperm.xlu0 %2188, %v1141_v49   ;;  %v1152_v9 = vld [vmem:[%s2407_s26 + $0x60] sm:$0xff]  ;;  %v345_v11 = vld [vmem:[%s2389_s13 + $0x50] sm:$0xff]  ;;  %v1153_v12 = vld [vmem:[%s2407_s26 + $0x68] sm:$0xff] }
  0x1f   : > { %1948 = vmatpush3.bf16.msra.mxu0 %v2208_v19  ;;  %v343_v10 = vld [vmem:[%s2389_s13 + $0x40] sm:$0xff]  ;;  %v385_v14 = vunpack.c.l.s8.bf16 %v345_v11  ;;  %v1154_v15 = vld [vmem:[%s2407_s26 + $0x70] sm:$0xff]  ;;  %v1155_v18 = vld [vmem:[%s2407_s26 + $0x78] sm:$0xff] }
  0x20   : > { %2060 = vmatpush3.bf16.msra.mxu1 %v2209_v20  ;;  %1949 = vmatprep.subr.bf16.mxu0 %v2210_v21  ;;  %v383_v13 = vunpack.c.l.s8.bf16 %v343_v10  ;;  %v1156_v19 = vld [vmem:[%s2407_s26 + $0x80] sm:$0xff]  ;;  %v348_v20 = vld [vmem:[%s2389_s13 + $0x68] sm:$0xff]  ;;  %v350_v21 = vld [vmem:[%s2389_s13 + $0x78] sm:$0xff] }
  0x21   : > { %2061 = vmatprep.subr.bf16.mxu1 %v2211_v22  ;;  %1199 = vperm.xlu1 %2189, %v1145_v56   ;;  %v1157_v22 = vld [vmem:[%s2407_s26 + $0x88] sm:$0xff]  ;;  %v1162_v35 = vld [vmem:[%s2407_s26 + $0xb0] sm:$0xff]  ;;  %v396_v36 = vunpack.c.h.s8.bf16 %v348_v20  ;;  %v1163_v38 = vld [vmem:[%s2407_s26 + $0xb8] sm:$0xff] }
  0x22   : > { %1194 = vperm.xlu0 %2188, %v1144_v53   ;;  %v352_v40 = vld [vmem:[%s2389_s13 + $0x88] sm:$0xff]  ;;  %v1166_v45 = vld [vmem:[%s2407_s26 + $0xd0] sm:$0xff]  ;;  %v1168_v49 = vld [vmem:[%s2407_s26 + $0xe0] sm:$0xff] }
  0x23   : > { %1950 = vmatpush3.bf16.msra.mxu0 %v2212_v23  ;;  %v387_v23 = vunpack.c.h.s8.bf16 %v343_v10  ;;  %v400_v46 = vunpack.c.l.s8.bf16 %v352_v40  ;;  %v1169_v52 = vld [vmem:[%s2407_s26 + $0xe8] sm:$0xff]  ;;  %v1170_v55 = vld [vmem:[%s2407_s26 + $0xf0] sm:$0xff]  ;;  %v404_v56 = vunpack.c.h.s8.bf16 %v352_v40  ;;  %v355_v1 = vld [vmem:[%s2389_s13 + $0xa0] sm:$0xff] }
  0x24   : > { %2062 = vmatpush3.bf16.msra.mxu1 %v2213_v24  ;;  %1951 = vmatprep.subr.bf16.mxu0 %v2214_v25  ;;  %v389_v24 = vunpack.c.h.s8.bf16 %v345_v11  ;;  %v1158_v25 = vld [vmem:[%s2407_s26 + $0x90] sm:$0xff] }
  0x25   : > { %2063 = vmatprep.subr.bf16.mxu1 %v2215_v26  ;;  %1209 = vperm.xlu1 %2189, %v1147_v62   ;;  %v392_v26 = vunpack.c.l.s8.bf16 %v348_v20  ;;  %v366_v20 = vld [vmem:[%s2389_s13 + $0xf8] sm:$0xff] }
  0x26   : > { %1204 = vperm.xlu0 %2188, %v1146_v59   ;;  %v356_v59 = vld [vmem:[%s2389_s13 + $0xa8] sm:$0xff] }
  0x27   : > { %1952 = vmatpush3.bf16.msra.mxu0 %v2216_v27  ;;  %v394_v27 = vunpack.c.l.s8.bf16 %v350_v21 }
  0x28   : > { %2064 = vmatpush3.bf16.msra.mxu1 %v2217_v28  ;;  %1953 = vmatprep.subr.bf16.mxu0 %v2218_v29  ;;  %v1159_v28 = vld [vmem:[%s2407_s26 + $0x98] sm:$0xff]  ;;  %v1160_v29 = vld [vmem:[%s2407_s26 + $0xa0] sm:$0xff] }
  0x29   : > { %2065 = vmatprep.subr.bf16.mxu1 %v2219_v30  ;;  %1219 = vperm.xlu1 %2189, %v1149_v2   ;;  %v347_v30 = vld [vmem:[%s2389_s13 + $0x60] sm:$0xff]  ;;  %v357_v2 = vld [vmem:[%s2389_s13 + $0xb0] sm:$0xff] }
  0x2a   : > { %1214 = vperm.xlu0 %2188, %v1148_v63   ;;  %v391_v33 = vunpack.c.l.s8.bf16 %v347_v30  ;;  %v395_v43 = vunpack.c.h.s8.bf16 %v347_v30  ;;  %v408_v63 = vunpack.c.l.s8.bf16 %v356_v59  ;;  %v413_v10 = vunpack.c.h.s8.bf16 %v357_v2 }
  0x2b   : > { %1954 = vmatpush3.bf16.msra.mxu0 %v2220_v31  ;;  %v349_v31 = vld [vmem:[%s2389_s13 + $0x70] sm:$0xff]  ;;  %v430_v30 = vunpack.c.h.s8.bf16 %v366_v20 }
  0x2c   : > { %2066 = vmatpush3.bf16.msra.mxu1 %v2221_v32  ;;  %v1161_v32 = vld [vmem:[%s2407_s26 + $0xa8] sm:$0xff]  ;;  %v393_v34 = vunpack.c.l.s8.bf16 %v349_v31  ;;  %v397_v44 = vunpack.c.h.s8.bf16 %v349_v31 }
  0x2d   : > { %1229 = vperm.xlu1 %2189, %v1151_v8   ;;  %v362_v8 = vld [vmem:[%s2389_s13 + $0xd8] sm:$0xff] }
  0x2e   : > { %752 = vmatmul.mubr.bf16.vlgmr.msra.gmra.mxu0 %v367_v41  ;;  %1224 = vperm.xlu0 %2188, %v1150_v5   ;;  %v354_v41 = vld [vmem:[%s2389_s13 + $0x98] sm:$0xff]  ;;  %v412_v5 = vunpack.c.h.s8.bf16 %v356_v59 }
  0x2f   : > { %913 = vmatmul.mubr.bf16.vlgmr.msra.gmra.mxu1 %v369_v42  ;;  %759 = vmatprep.mubr.bf16.mxu0 %v372_v37  ;;  %v398_v37 = vunpack.c.h.s8.bf16 %v350_v21  ;;  %v1165_v42 = vld [vmem:[%s2407_s26 + $0xc8] sm:$0xff] }
  0x30   : > { %920 = vmatprep.mubr.bf16.mxu1 %v374_v39  ;;  %v1164_v39 = vld [vmem:[%s2407_s26 + $0xc0] sm:$0xff] }
  0x31   : > { %1239 = vperm.xlu1 %2189, %v1153_v12   ;;  %v418_v12 = vunpack.c.l.s8.bf16 %v362_v8 }
  0x32   : > { %1234 = vperm.xlu0 %2188, %v1152_v9   ;;  %v411_v9 = vunpack.c.h.s8.bf16 %v355_v1 }
  0x35   : > { %1249 = vperm.xlu1 %2189, %v1155_v18   ;;  %v422_v18 = vunpack.c.h.s8.bf16 %v362_v8 }
  0x36   : > { %760 = vmatmul.mubr.bf16.gmra.mxu0 %v371_v47  ;;  %1244 = vperm.xlu0 %2188, %v1154_v15   ;;  %v402_v47 = vunpack.c.l.s8.bf16 %v354_v41 }
  0x37   : > { %921 = vmatmul.mubr.bf16.gmra.mxu1 %v373_v48  ;;  %767 = vmatprep.mubr.bf16.mxu0 %v376_v50  ;;  %v1167_v48 = vld [vmem:[%s2407_s26 + $0xd8] sm:$0xff]  ;;  %v351_v50 = vld [vmem:[%s2389_s13 + $0x80] sm:$0xff] }
  0x38   : > { %928 = vmatprep.mubr.bf16.mxu1 %v378_v51  ;;  %v353_v51 = vld [vmem:[%s2389_s13 + $0x90] sm:$0xff]  ;;  %v399_v53 = vunpack.c.l.s8.bf16 %v351_v50 }
  0x39   : > { %1259 = vperm.xlu1 %2189, %v1157_v22   ;;  %v401_v54 = vunpack.c.l.s8.bf16 %v353_v51  ;;  %v405_v62 = vunpack.c.h.s8.bf16 %v353_v51 }
  0x3a   : > { %1254 = vperm.xlu0 %2188, %v1156_v19   ;;  %v364_v19 = vld [vmem:[%s2389_s13 + $0xe8] sm:$0xff] }
  0x3d   : > { %1269 = vperm.xlu1 %2189, %v1159_v28  }
  0x3e   : > { %768 = vmatmul.mubr.bf16.gmra.mxu0 %v375_v57  ;;  %1264 = vperm.xlu0 %2188, %v1158_v25   ;;  %v406_v57 = vunpack.c.h.s8.bf16 %v354_v41  ;;  %v363_v25 = vld [vmem:[%s2389_s13 + $0xe0] sm:$0xff] }
  0x3f   : > { %929 = vmatmul.mubr.bf16.gmra.mxu1 %v377_v58  ;;  %775 = vmatprep.mubr.bf16.mxu0 %v380_v60  ;;  %v1171_v58 = vld [vmem:[%s2407_s26 + $0xf8] sm:$0xff]  ;;  %v427_v31 = vunpack.c.h.s8.bf16 %v363_v25 }
  0x40   : > { %936 = vmatprep.mubr.bf16.mxu1 %v382_v61  ;;  %v358_v60 = vld [vmem:[%s2389_s13 + $0xb8] sm:$0xff]  ;;  %v403_v61 = vunpack.c.h.s8.bf16 %v351_v50 }
  0x41   : > { %1279 = vperm.xlu1 %2189, %v1161_v32   ;;  %v410_v0 = vunpack.c.l.s8.bf16 %v358_v60 }
  0x42   : > { %1274 = vperm.xlu0 %2188, %v1160_v29   ;;  %v428_v29 = vunpack.c.h.s8.bf16 %v364_v19 }
  0x45   : > { %1289 = vperm.xlu1 %2189, %v1163_v38  }
  0x46   : > { %776 = vmatmul.mubr.bf16.gmra.mxu0 %v379_v3  ;;  %1284 = vperm.xlu0 %2188, %v1162_v35   ;;  %v407_v3 = vunpack.c.l.s8.bf16 %v355_v1 }
  0x47   : > { %937 = vmatmul.mubr.bf16.gmra.mxu1 %v381_v4  ;;  %783 = vmatprep.mubr.bf16.mxu0 %v384_v6  ;;  %v409_v4 = vunpack.c.l.s8.bf16 %v357_v2  ;;  %v414_v6 = vunpack.c.h.s8.bf16 %v358_v60 }
  0x48   : > { %944 = vmatprep.mubr.bf16.mxu1 %v386_v7  ;;  %v360_v7 = vld [vmem:[%s2389_s13 + $0xc8] sm:$0xff] }
  0x49   : > { %1299 = vperm.xlu1 %2189, %v1165_v42   ;;  %v416_v11 = vunpack.c.l.s8.bf16 %v360_v7 }
  0x4a   : > { %1294 = vperm.xlu0 %2188, %v1164_v39  }
  0x4d   : > { %1309 = vperm.xlu1 %2189, %v1167_v48  }
  0x4e   : > { %784 = vmatmul.mubr.bf16.gmra.mxu0 %v383_v13  ;;  %1304 = vperm.xlu0 %2188, %v1166_v45   ;;  %v359_v13 = vld [vmem:[%s2389_s13 + $0xc0] sm:$0xff] }
  0x4f   : > { %945 = vmatmul.mubr.bf16.gmra.mxu1 %v385_v14  ;;  %791 = vmatprep.mubr.bf16.mxu0 %v388_v16  ;;  %v361_v14 = vld [vmem:[%s2389_s13 + $0xd0] sm:$0xff]  ;;  %v415_v15 = vunpack.c.l.s8.bf16 %v359_v13  ;;  %v419_v21 = vunpack.c.h.s8.bf16 %v359_v13 }
  0x50   : > { %952 = vmatprep.mubr.bf16.mxu1 %v390_v17  ;;  %v417_v16 = vunpack.c.l.s8.bf16 %v361_v14  ;;  %v420_v17 = vunpack.c.h.s8.bf16 %v360_v7  ;;  %v421_v22 = vunpack.c.h.s8.bf16 %v361_v14 }
  0x51   : > { %1319 = vperm.xlu1 %2189, %v1169_v52  }
  0x52   : > { %1314 = vperm.xlu0 %2188, %v1168_v49  }
  0x55   : > { %1329 = vperm.xlu1 %2189, %v1171_v58  }
  0x56   : > { %792 = vmatmul.mubr.bf16.gmra.mxu0 %v387_v23  ;;  %1324 = vperm.xlu0 %2188, %v1170_v55   ;;  %v424_v23 = vunpack.c.l.s8.bf16 %v364_v19 }
  0x57   : > { %953 = vmatmul.mubr.bf16.gmra.mxu1 %v389_v24  ;;  %799 = vmatprep.mubr.bf16.mxu0 %v392_v26  ;;  %v426_v24 = vunpack.c.l.s8.bf16 %v366_v20  ;;  %v365_v26 = vld [vmem:[%s2389_s13 + $0xf0] sm:$0xff] }
  0x58   : > { %960 = vmatprep.mubr.bf16.mxu1 %v394_v27  ;;  %v423_v27 = vunpack.c.l.s8.bf16 %v363_v25  ;;  %v425_v28 = vunpack.c.l.s8.bf16 %v365_v26  ;;  %v429_v32 = vunpack.c.h.s8.bf16 %v365_v26 }
  0x5e   : > { %800 = vmatmul.mubr.bf16.gmra.mxu0 %v391_v33 }
  0x5f   : > { %961 = vmatmul.mubr.bf16.gmra.mxu1 %v393_v34  ;;  %807 = vmatprep.mubr.bf16.mxu0 %v396_v36 }
  0x60   : > { %968 = vmatprep.mubr.bf16.mxu1 %v398_v37 }
  0x66   : > { %808 = vmatmul.mubr.bf16.gmra.mxu0 %v395_v43 }
  0x67   : > { %969 = vmatmul.mubr.bf16.gmra.mxu1 %v397_v44  ;;  %815 = vmatprep.mubr.bf16.mxu0 %v400_v46  ;;  %v1364_v46 = vld [vmem:[%s2474_s28] sm:$0xff] }
  0x68   : > { %976 = vmatprep.mubr.bf16.mxu1 %v402_v47 }
  0x6e   : > { %816 = vmatmul.mubr.bf16.gmra.mxu0 %v399_v53 }
  0x6f   : > { %977 = vmatmul.mubr.bf16.gmra.mxu1 %v401_v54  ;;  %823 = vmatprep.mubr.bf16.mxu0 %v404_v56  ;;  %v1365_v54 = vld [vmem:[%s2474_s28 + $0x8] sm:$0xff] }
  0x70   : > { %984 = vmatprep.mubr.bf16.mxu1 %v406_v57 }
  0x76   : > { %824 = vmatmul.mubr.bf16.gmra.mxu0 %v403_v61 }
  0x77   : > { %985 = vmatmul.mubr.bf16.gmra.mxu1 %v405_v62  ;;  %831 = vmatprep.mubr.bf16.mxu0 %v408_v63 }
  0x78   : > { %992 = vmatprep.mubr.bf16.mxu1 %v410_v0 }
  0x7e   : > { %832 = vmatmul.mubr.bf16.gmra.mxu0 %v407_v3 }
  0x7f   : > { %993 = vmatmul.mubr.bf16.gmra.mxu1 %v409_v4  ;;  %839 = vmatprep.mubr.bf16.mxu0 %v412_v5 }
  0x80   : > { %1000 = vmatprep.mubr.bf16.mxu1 %v414_v6  ;;  %v1366_v6 = vld [vmem:[%s2474_s28 + $0x10] sm:$0xff] }
  0x86   : > { %840 = vmatmul.mubr.bf16.gmra.mxu0 %v411_v9 }
  0x87   : > { %1001 = vmatmul.mubr.bf16.gmra.mxu1 %v413_v10  ;;  %847 = vmatprep.mubr.bf16.mxu0 %v416_v11 }
  0x88   : > { %1008 = vmatprep.mubr.bf16.mxu1 %v418_v12 }
  0x8e   : > { %848 = vmatmul.mubr.bf16.gmra.mxu0 %v415_v15  ;;  %v1367_v15 = vld [vmem:[%s2474_s28 + $0x18] sm:$0xff] }
  0x8f   : > { %1009 = vmatmul.mubr.bf16.gmra.mxu1 %v417_v16  ;;  %855 = vmatprep.mubr.bf16.mxu0 %v420_v17 }
  0x90   : > { %1016 = vmatprep.mubr.bf16.mxu1 %v422_v18 }
  0x94   : > { %v1185_v57 = vpop.permute.xlu1 %1184 }
  0x95   : > { %v1175_v35 = vpop.permute.xlu0 %1174 }
  0x96   : > { %856 = vmatmul.mubr.bf16.gmra.mxu0 %v419_v21 }
  0x97   : > { %1017 = vmatmul.mubr.bf16.gmra.mxu1 %v421_v22  ;;  %863 = vmatprep.mubr.bf16.mxu0 %v424_v23 }
  0x98   : > { %1024 = vmatprep.mubr.bf16.mxu1 %v426_v24  ;;  %v1190_v12 = vpop.permute.xlu1 %1189 }
  0x99   : > { %v1180_v49 = vpop.permute.xlu0 %1179 }
  0x9d   : > { %v1195_v24 = vpop.permute.xlu0 %1194 }
  0x9e   : > { %864 = vmatmul.mubr.bf16.gmra.mxu0 %v423_v27 }
  0x9f   : > { %1025 = vmatmul.mubr.bf16.gmra.mxu1 %v425_v28  ;;  %871 = vmatprep.mubr.bf16.mxu0 %v428_v29 }
  0xa0   : > { %1032 = vmatprep.mubr.bf16.mxu1 %v430_v30 }
  0xa6   : > { %872 = vmatmul.mubr.bf16.gmra.mxu0 %v427_v31  ;;  %v1368_v31 = vld [vmem:[%s2474_s28 + $0x20] sm:$0xff] }
  0xa7   : > { %1033 = vmatmul.mubr.bf16.gmra.mxu1 %v429_v32 }
  0xee   : > { %v1955_v33 = vpop.f32.mrf.mxu0 }
  0xef   : > { %v2067_v34 = vpop.f32.mrf.mxu1 }
  0xf0   : > { %v1956_v36 = vpop.f32.mrf.mxu0 }
  0xf1   : > { %v2068_v37 = vpop.f32.mrf.mxu1  ;;  %v1957_v38 = vadd.f32 %v1956_v36, %v1955_v33 }
  0xf2   : > { %v2069_v39 = vadd.f32 %v2068_v37, %v2067_v34  ;;  %v1958_v40 = vpop.f32.mrf.mxu0  ;;  %v1200_v37 = vpop.permute.xlu1 %1199 }
  0xf3   : > { %v2070_v41 = vpop.f32.mrf.mxu1 }
  0xf4   : > { %v915_v42 = vadd.f32 %v2069_v39, %v1957_v38  ;;  %v1959_v43 = vpop.f32.mrf.mxu0 }
  0xf5   : > { %v2071_v44 = vpop.f32.mrf.mxu1  ;;  %v1960_v47 = vadd.f32 %v1959_v43, %v1958_v40  ;;  %v1369_v40 = vld [vmem:[%s2474_s28 + $0x28] sm:$0xff] }
  0xf6   : > { %v1332_v45 = vmul.f32 %v1175_v35, %v915_v42  ;;  %v2072_v48 = vadd.f32 %v2071_v44, %v2070_v41  ;;  %v1961_v50 = vpop.f32.mrf.mxu0 }
  0xf7   : > { %v2073_v51 = vpop.f32.mrf.mxu1 }
  0xf8   : > { %v918_v52 = vadd.f32 %v2072_v48, %v1960_v47  ;;  %v1396_v53 = vadd.f32 %v1364_v46, %v1332_v45  ;;  %v1962_v55 = vpop.f32.mrf.mxu0  ;;  %v1205_v48 = vpop.permute.xlu0 %1204 }
  0xf9   : > { %v2074_v56 = vpop.f32.mrf.mxu1  ;;  %v1963_v59 = vadd.f32 %v1962_v55, %v1961_v50 }
  0xfa   : > { %v1333_v58 = vmul.f32 %v1180_v49, %v918_v52  ;;  %v2075_v60 = vadd.f32 %v2074_v56, %v2073_v51  ;;  %v1964_v61 = vpop.f32.mrf.mxu0  ;;  %v1428_v1 = vmax.f32 %v1396_v53, 0.0  ;;  %v1370_v56 = vld [vmem:[%s2474_s28 + $0x30] sm:$0xff] }
  0xfb   : > { %v2076_v62 = vpop.f32.mrf.mxu1 }
  0xfc   : > { %v1397_v63 = vadd.f32 %v1365_v54, %v1333_v58  ;;  %v923_v0 = vadd.f32 %v2075_v60, %v1963_v59  ;;  %v1965_v2 = vpop.f32.mrf.mxu0 }
  0xfd   : > { %v2077_v3 = vpop.f32.mrf.mxu1  ;;  %v1966_v7 = vadd.f32 %v1965_v2, %v1964_v61  ;;  %v1210_v61 = vpop.permute.xlu1 %1209 }
  0xfe   : > { %v1429_v4 = vmax.f32 %v1397_v63, 0.0  ;;  %v1334_v5 = vmul.f32 %v1185_v57, %v923_v0  ;;  %v2078_v8 = vadd.f32 %v2077_v3, %v2076_v62  ;;  %v1967_v9 = vpop.f32.mrf.mxu0 }
  0xff   : > { %v2079_v10 = vpop.f32.mrf.mxu1 }
 0x100   : > { %v1847_v11 = vpack.c.bf16 %v1429_v4, %v1428_v1  ;;  %v926_v13 = vadd.f32 %v2078_v8, %v1966_v7  ;;  %v1398_v14 = vadd.f32 %v1366_v6, %v1334_v5  ;;  %v1968_v16 = vpop.f32.mrf.mxu0  ;;  %v1371_v1 = vld [vmem:[%s2474_s28 + $0x38] sm:$0xff] }
 0x101   : > { %v2080_v17 = vpop.f32.mrf.mxu1  ;;  %v1969_v19 = vadd.f32 %v1968_v16, %v1967_v9  ;;  %v1215_v9 = vpop.permute.xlu0 %1214 }
 0x102   : > { %1848 = vst [vmem:[%s2483_s7] sm:$0xff] %v1847_v11   ;;  %v1335_v18 = vmul.f32 %v1190_v12, %v926_v13  ;;  %v2081_v20 = vadd.f32 %v2080_v17, %v2079_v10  ;;  %v1970_v21 = vpop.f32.mrf.mxu0  ;;  %v1430_v26 = vmax.f32 %v1398_v14, 0.0  ;;  %v1372_v17 = vld [vmem:[%s2474_s28 + $0x40] sm:$0xff] }
 0x103   : > { %v2082_v22 = vpop.f32.mrf.mxu1 }
 0x104   : > { %v1399_v23 = vadd.f32 %v1367_v15, %v1335_v18  ;;  %v931_v25 = vadd.f32 %v2081_v20, %v1969_v19  ;;  %v1971_v27 = vpop.f32.mrf.mxu0 }
 0x105   : > { %v2083_v28 = vpop.f32.mrf.mxu1  ;;  %v1972_v32 = vadd.f32 %v1971_v27, %v1970_v21 }
 0x106   : > { %v1431_v29 = vmax.f32 %v1399_v23, 0.0  ;;  %v1336_v30 = vmul.f32 %v1195_v24, %v931_v25  ;;  %v2084_v33 = vadd.f32 %v2083_v28, %v2082_v22  ;;  %v1973_v34 = vpop.f32.mrf.mxu0  ;;  %v1220_v22 = vpop.permute.xlu1 %1219 }
 0x107   : > { %v2085_v35 = vpop.f32.mrf.mxu1 }
 0x108   : > { %v1852_v36 = vpack.c.bf16 %v1431_v29, %v1430_v26  ;;  %v934_v38 = vadd.f32 %v2084_v33, %v1972_v32  ;;  %v1400_v39 = vadd.f32 %v1368_v31, %v1336_v30  ;;  %v1974_v41 = vpop.f32.mrf.mxu0  ;;  %v1373_v26 = vld [vmem:[%s2474_s28 + $0x48] sm:$0xff] }
 0x109   : > { %v2086_v42 = vpop.f32.mrf.mxu1  ;;  %v1975_v44 = vadd.f32 %v1974_v41, %v1973_v34  ;;  %v1225_v34 = vpop.permute.xlu0 %1224 }
 0x10a   : > { %1924 = vst [vmem:[%s2483_s7 + $0x8] sm:$0xff] %v1852_v36   ;;  %v1337_v43 = vmul.f32 %v1200_v37, %v934_v38  ;;  %v2087_v45 = vadd.f32 %v2086_v42, %v2085_v35  ;;  %v1976_v46 = vpop.f32.mrf.mxu0  ;;  %v1432_v51 = vmax.f32 %v1400_v39, 0.0  ;;  %v1374_v42 = vld [vmem:[%s2474_s28 + $0x50] sm:$0xff] }
 0x10b   : > { %v2088_v47 = vpop.f32.mrf.mxu1 }
 0x10c   : > { %v1401_v49 = vadd.f32 %v1369_v40, %v1337_v43  ;;  %v939_v50 = vadd.f32 %v2087_v45, %v1975_v44  ;;  %v1977_v52 = vpop.f32.mrf.mxu0 }
 0x10d   : > { %v2089_v53 = vpop.f32.mrf.mxu1  ;;  %v1978_v57 = vadd.f32 %v1977_v52, %v1976_v46 }
 0x10e   : > { %v1433_v54 = vmax.f32 %v1401_v49, 0.0  ;;  %v1338_v55 = vmul.f32 %v1205_v48, %v939_v50  ;;  %v2090_v58 = vadd.f32 %v2089_v53, %v2088_v47  ;;  %v1979_v59 = vpop.f32.mrf.mxu0  ;;  %v1230_v47 = vpop.permute.xlu1 %1229 }
 0x10f   : > { %v2091_v60 = vpop.f32.mrf.mxu1 }
 0x110   : > { %v1857_v62 = vpack.c.bf16 %v1433_v54, %v1432_v51  ;;  %v942_v63 = vadd.f32 %v2090_v58, %v1978_v57  ;;  %v1402_v0 = vadd.f32 %v1370_v56, %v1338_v55  ;;  %v1980_v2 = vpop.f32.mrf.mxu0  ;;  %v1375_v51 = vld [vmem:[%s2474_s28 + $0x58] sm:$0xff] }
 0x111   : > { %v2092_v3 = vpop.f32.mrf.mxu1  ;;  %v1981_v5 = vadd.f32 %v1980_v2, %v1979_v59  ;;  %v1235_v59 = vpop.permute.xlu0 %1234 }
 0x112   : > { %1925 = vst [vmem:[%s2483_s7 + $0x10] sm:$0xff] %v1857_v62   ;;  %v1339_v4 = vmul.f32 %v1210_v61, %v942_v63  ;;  %v2093_v6 = vadd.f32 %v2092_v3, %v2091_v60  ;;  %v1982_v7 = vpop.f32.mrf.mxu0  ;;  %v1434_v12 = vmax.f32 %v1402_v0, 0.0  ;;  %v1376_v3 = vld [vmem:[%s2474_s28 + $0x60] sm:$0xff] }
 0x113   : > { %v2094_v8 = vpop.f32.mrf.mxu1 }
 0x114   : > { %v1403_v10 = vadd.f32 %v1371_v1, %v1339_v4  ;;  %v947_v11 = vadd.f32 %v2093_v6, %v1981_v5  ;;  %v1983_v13 = vpop.f32.mrf.mxu0 }
 0x115   : > { %v2095_v14 = vpop.f32.mrf.mxu1  ;;  %v1984_v18 = vadd.f32 %v1983_v13, %v1982_v7 }
 0x116   : > { %v1435_v15 = vmax.f32 %v1403_v10, 0.0  ;;  %v1340_v16 = vmul.f32 %v1215_v9, %v947_v11  ;;  %v2096_v19 = vadd.f32 %v2095_v14, %v2094_v8  ;;  %v1985_v20 = vpop.f32.mrf.mxu0  ;;  %v1240_v8 = vpop.permute.xlu1 %1239 }
 0x117   : > { %v2097_v21 = vpop.f32.mrf.mxu1 }
 0x118   : > { %v1862_v23 = vpack.c.bf16 %v1435_v15, %v1434_v12  ;;  %v950_v24 = vadd.f32 %v2096_v19, %v1984_v18  ;;  %v1404_v25 = vadd.f32 %v1372_v17, %v1340_v16  ;;  %v1986_v27 = vpop.f32.mrf.mxu0  ;;  %v1377_v12 = vld [vmem:[%s2474_s28 + $0x68] sm:$0xff] }
 0x119   : > { %v2098_v28 = vpop.f32.mrf.mxu1  ;;  %v1987_v30 = vadd.f32 %v1986_v27, %v1985_v20  ;;  %v1245_v20 = vpop.permute.xlu0 %1244 }
 0x11a   : > { %1926 = vst [vmem:[%s2483_s7 + $0x18] sm:$0xff] %v1862_v23   ;;  %v1341_v29 = vmul.f32 %v1220_v22, %v950_v24  ;;  %v2099_v31 = vadd.f32 %v2098_v28, %v2097_v21  ;;  %v1988_v32 = vpop.f32.mrf.mxu0  ;;  %v1436_v37 = vmax.f32 %v1404_v25, 0.0  ;;  %v1378_v28 = vld [vmem:[%s2474_s28 + $0x70] sm:$0xff] }
 0x11b   : > { %v2100_v33 = vpop.f32.mrf.mxu1 }
 0x11c   : > { %v1405_v35 = vadd.f32 %v1373_v26, %v1341_v29  ;;  %v955_v36 = vadd.f32 %v2099_v31, %v1987_v30  ;;  %v1989_v38 = vpop.f32.mrf.mxu0 }
 0x11d   : > { %v2101_v39 = vpop.f32.mrf.mxu1  ;;  %v1990_v43 = vadd.f32 %v1989_v38, %v1988_v32 }
 0x11e   : > { %v1437_v40 = vmax.f32 %v1405_v35, 0.0  ;;  %v1342_v41 = vmul.f32 %v1225_v34, %v955_v36  ;;  %v2102_v44 = vadd.f32 %v2101_v39, %v2100_v33  ;;  %v1991_v45 = vpop.f32.mrf.mxu0  ;;  %v1250_v33 = vpop.permute.xlu1 %1249 }
 0x11f   : > { %v2103_v46 = vpop.f32.mrf.mxu1 }
 0x120   : > { %v1867_v48 = vpack.c.bf16 %v1437_v40, %v1436_v37  ;;  %v958_v49 = vadd.f32 %v2102_v44, %v1990_v43  ;;  %v1406_v50 = vadd.f32 %v1374_v42, %v1342_v41  ;;  %v1992_v52 = vpop.f32.mrf.mxu0  ;;  %v1379_v37 = vld [vmem:[%s2474_s28 + $0x78] sm:$0xff] }
 0x121   : > { %v2104_v53 = vpop.f32.mrf.mxu1  ;;  %v1993_v55 = vadd.f32 %v1992_v52, %v1991_v45  ;;  %v1255_v45 = vpop.permute.xlu0 %1254 }
 0x122   : > { %1927 = vst [vmem:[%s2483_s7 + $0x20] sm:$0xff] %v1867_v48   ;;  %v1343_v54 = vmul.f32 %v1230_v47, %v958_v49  ;;  %v2105_v56 = vadd.f32 %v2104_v53, %v2103_v46  ;;  %v1994_v57 = vpop.f32.mrf.mxu0  ;;  %v1438_v62 = vmax.f32 %v1406_v50, 0.0  ;;  %v1380_v53 = vld [vmem:[%s2474_s28 + $0x80] sm:$0xff] }
 0x123   : > { %v2106_v58 = vpop.f32.mrf.mxu1 }
 0x124   : > { %v1407_v60 = vadd.f32 %v1375_v51, %v1343_v54  ;;  %v963_v61 = vadd.f32 %v2105_v56, %v1993_v55  ;;  %v1995_v63 = vpop.f32.mrf.mxu0 }
 0x125   : > { %v2107_v0 = vpop.f32.mrf.mxu1  ;;  %v1996_v4 = vadd.f32 %v1995_v63, %v1994_v57 }
 0x126   : > { %v1439_v1 = vmax.f32 %v1407_v60, 0.0  ;;  %v1344_v2 = vmul.f32 %v1235_v59, %v963_v61  ;;  %v2108_v5 = vadd.f32 %v2107_v0, %v2106_v58  ;;  %v1997_v6 = vpop.f32.mrf.mxu0  ;;  %v1260_v58 = vpop.permute.xlu1 %1259 }
 0x127   : > { %v2109_v7 = vpop.f32.mrf.mxu1 }
 0x128   : > { %v1872_v9 = vpack.c.bf16 %v1439_v1, %v1438_v62  ;;  %v966_v10 = vadd.f32 %v2108_v5, %v1996_v4  ;;  %v1408_v11 = vadd.f32 %v1376_v3, %v1344_v2  ;;  %v1998_v13 = vpop.f32.mrf.mxu0  ;;  %v1381_v62 = vld [vmem:[%s2474_s28 + $0x88] sm:$0xff] }
 0x129   : > { %v2110_v14 = vpop.f32.mrf.mxu1  ;;  %v1999_v16 = vadd.f32 %v1998_v13, %v1997_v6  ;;  %v1265_v6 = vpop.permute.xlu0 %1264 }
 0x12a   : > { %1928 = vst [vmem:[%s2483_s7 + $0x28] sm:$0xff] %v1872_v9   ;;  %v1345_v15 = vmul.f32 %v1240_v8, %v966_v10  ;;  %v2111_v17 = vadd.f32 %v2110_v14, %v2109_v7  ;;  %v2000_v18 = vpop.f32.mrf.mxu0  ;;  %v1440_v23 = vmax.f32 %v1408_v11, 0.0  ;;  %v1382_v14 = vld [vmem:[%s2474_s28 + $0x90] sm:$0xff] }
 0x12b   : > { %v2112_v19 = vpop.f32.mrf.mxu1 }
 0x12c   : > { %v1409_v21 = vadd.f32 %v1377_v12, %v1345_v15  ;;  %v971_v22 = vadd.f32 %v2111_v17, %v1999_v16  ;;  %v2001_v24 = vpop.f32.mrf.mxu0 }
 0x12d   : > { %v2113_v25 = vpop.f32.mrf.mxu1  ;;  %v2002_v29 = vadd.f32 %v2001_v24, %v2000_v18 }
 0x12e   : > { %v1441_v26 = vmax.f32 %v1409_v21, 0.0  ;;  %v1346_v27 = vmul.f32 %v1245_v20, %v971_v22  ;;  %v2114_v30 = vadd.f32 %v2113_v25, %v2112_v19  ;;  %v2003_v31 = vpop.f32.mrf.mxu0  ;;  %v1270_v19 = vpop.permute.xlu1 %1269 }
 0x12f   : > { %v2115_v32 = vpop.f32.mrf.mxu1 }
 0x130   : > { %v1877_v34 = vpack.c.bf16 %v1441_v26, %v1440_v23  ;;  %v974_v35 = vadd.f32 %v2114_v30, %v2002_v29  ;;  %v1410_v36 = vadd.f32 %v1378_v28, %v1346_v27  ;;  %v2004_v38 = vpop.f32.mrf.mxu0  ;;  %v1383_v23 = vld [vmem:[%s2474_s28 + $0x98] sm:$0xff] }
 0x131   : > { %v2116_v39 = vpop.f32.mrf.mxu1  ;;  %v2005_v41 = vadd.f32 %v2004_v38, %v2003_v31  ;;  %v1275_v31 = vpop.permute.xlu0 %1274 }
 0x132   : > { %1929 = vst [vmem:[%s2483_s7 + $0x30] sm:$0xff] %v1877_v34   ;;  %v1347_v40 = vmul.f32 %v1250_v33, %v974_v35  ;;  %v2117_v42 = vadd.f32 %v2116_v39, %v2115_v32  ;;  %v2006_v43 = vpop.f32.mrf.mxu0  ;;  %v1442_v48 = vmax.f32 %v1410_v36, 0.0  ;;  %v1384_v39 = vld [vmem:[%s2474_s28 + $0xa0] sm:$0xff] }
 0x133   : > { %v2118_v44 = vpop.f32.mrf.mxu1 }
 0x134   : > { %v1411_v46 = vadd.f32 %v1379_v37, %v1347_v40  ;;  %v979_v47 = vadd.f32 %v2117_v42, %v2005_v41  ;;  %v2007_v49 = vpop.f32.mrf.mxu0 }
 0x135   : > { %v2119_v50 = vpop.f32.mrf.mxu1  ;;  %v2008_v54 = vadd.f32 %v2007_v49, %v2006_v43 }
 0x136   : > { %v1443_v51 = vmax.f32 %v1411_v46, 0.0  ;;  %v1348_v52 = vmul.f32 %v1255_v45, %v979_v47  ;;  %v2120_v55 = vadd.f32 %v2119_v50, %v2118_v44  ;;  %v2009_v56 = vpop.f32.mrf.mxu0  ;;  %v1280_v44 = vpop.permute.xlu1 %1279 }
 0x137   : > { %v2121_v57 = vpop.f32.mrf.mxu1 }
 0x138   : > { %v1882_v59 = vpack.c.bf16 %v1443_v51, %v1442_v48  ;;  %v982_v60 = vadd.f32 %v2120_v55, %v2008_v54  ;;  %v1412_v61 = vadd.f32 %v1380_v53, %v1348_v52  ;;  %v2010_v63 = vpop.f32.mrf.mxu0  ;;  %v1385_v48 = vld [vmem:[%s2474_s28 + $0xa8] sm:$0xff] }
 0x139   : > { %v2122_v0 = vpop.f32.mrf.mxu1  ;;  %v2011_v2 = vadd.f32 %v2010_v63, %v2009_v56  ;;  %v1285_v56 = vpop.permute.xlu0 %1284 }
 0x13a   : > { %1930 = vst [vmem:[%s2483_s7 + $0x38] sm:$0xff] %v1882_v59   ;;  %v1349_v1 = vmul.f32 %v1260_v58, %v982_v60  ;;  %v2123_v3 = vadd.f32 %v2122_v0, %v2121_v57  ;;  %v2012_v4 = vpop.f32.mrf.mxu0  ;;  %v1444_v9 = vmax.f32 %v1412_v61, 0.0  ;;  %v1386_v0 = vld [vmem:[%s2474_s28 + $0xb0] sm:$0xff] }
 0x13b   : > { %v2124_v5 = vpop.f32.mrf.mxu1 }
 0x13c   : > { %v1413_v7 = vadd.f32 %v1381_v62, %v1349_v1  ;;  %v987_v8 = vadd.f32 %v2123_v3, %v2011_v2  ;;  %v2013_v10 = vpop.f32.mrf.mxu0 }
 0x13d   : > { %v2125_v11 = vpop.f32.mrf.mxu1  ;;  %v2014_v15 = vadd.f32 %v2013_v10, %v2012_v4 }
 0x13e   : > { %v1445_v12 = vmax.f32 %v1413_v7, 0.0  ;;  %v1350_v13 = vmul.f32 %v1265_v6, %v987_v8  ;;  %v2126_v16 = vadd.f32 %v2125_v11, %v2124_v5  ;;  %v2015_v17 = vpop.f32.mrf.mxu0  ;;  %v1290_v5 = vpop.permute.xlu1 %1289 }
 0x13f   : > { %v2127_v18 = vpop.f32.mrf.mxu1 }
 0x140   : > { %v1887_v20 = vpack.c.bf16 %v1445_v12, %v1444_v9  ;;  %v990_v21 = vadd.f32 %v2126_v16, %v2014_v15  ;;  %v1414_v22 = vadd.f32 %v1382_v14, %v1350_v13  ;;  %v2016_v24 = vpop.f32.mrf.mxu0  ;;  %v1387_v9 = vld [vmem:[%s2474_s28 + $0xb8] sm:$0xff] }
 0x141   : > { %v2128_v25 = vpop.f32.mrf.mxu1  ;;  %v2017_v27 = vadd.f32 %v2016_v24, %v2015_v17  ;;  %v1295_v17 = vpop.permute.xlu0 %1294 }
 0x142   : > { %1931 = vst [vmem:[%s2483_s7 + $0x40] sm:$0xff] %v1887_v20   ;;  %v1351_v26 = vmul.f32 %v1270_v19, %v990_v21  ;;  %v2129_v28 = vadd.f32 %v2128_v25, %v2127_v18  ;;  %v2018_v29 = vpop.f32.mrf.mxu0  ;;  %v1446_v34 = vmax.f32 %v1414_v22, 0.0  ;;  %v1388_v25 = vld [vmem:[%s2474_s28 + $0xc0] sm:$0xff] }
 0x143   : > { %v2130_v30 = vpop.f32.mrf.mxu1 }
 0x144   : > { %v1415_v32 = vadd.f32 %v1383_v23, %v1351_v26  ;;  %v995_v33 = vadd.f32 %v2129_v28, %v2017_v27  ;;  %v2019_v35 = vpop.f32.mrf.mxu0 }
 0x145   : > { %v2131_v36 = vpop.f32.mrf.mxu1  ;;  %v2020_v40 = vadd.f32 %v2019_v35, %v2018_v29 }
 0x146   : > { %v1447_v37 = vmax.f32 %v1415_v32, 0.0  ;;  %v1352_v38 = vmul.f32 %v1275_v31, %v995_v33  ;;  %v2132_v41 = vadd.f32 %v2131_v36, %v2130_v30  ;;  %v2021_v42 = vpop.f32.mrf.mxu0  ;;  %v1300_v30 = vpop.permute.xlu1 %1299 }
 0x147   : > { %v2133_v43 = vpop.f32.mrf.mxu1 }
 0x148   : > { %v1892_v45 = vpack.c.bf16 %v1447_v37, %v1446_v34  ;;  %v998_v46 = vadd.f32 %v2132_v41, %v2020_v40  ;;  %v1416_v47 = vadd.f32 %v1384_v39, %v1352_v38  ;;  %v2022_v49 = vpop.f32.mrf.mxu0  ;;  %v1389_v34 = vld [vmem:[%s2474_s28 + $0xc8] sm:$0xff] }
 0x149   : > { %v2134_v50 = vpop.f32.mrf.mxu1  ;;  %v2023_v52 = vadd.f32 %v2022_v49, %v2021_v42  ;;  %v1305_v42 = vpop.permute.xlu0 %1304 }
 0x14a   : > { %1932 = vst [vmem:[%s2483_s7 + $0x48] sm:$0xff] %v1892_v45   ;;  %v1353_v51 = vmul.f32 %v1280_v44, %v998_v46  ;;  %v2135_v53 = vadd.f32 %v2134_v50, %v2133_v43  ;;  %v2024_v54 = vpop.f32.mrf.mxu0  ;;  %v1448_v59 = vmax.f32 %v1416_v47, 0.0  ;;  %v1390_v50 = vld [vmem:[%s2474_s28 + $0xd0] sm:$0xff] }
 0x14b   : > { %v2136_v55 = vpop.f32.mrf.mxu1 }
 0x14c   : > { %v1417_v57 = vadd.f32 %v1385_v48, %v1353_v51  ;;  %v1003_v58 = vadd.f32 %v2135_v53, %v2023_v52  ;;  %v2025_v60 = vpop.f32.mrf.mxu0 }
 0x14d   : > { %v2137_v61 = vpop.f32.mrf.mxu1  ;;  %v2026_v1 = vadd.f32 %v2025_v60, %v2024_v54 }
 0x14e   : > { %v1449_v62 = vmax.f32 %v1417_v57, 0.0  ;;  %v1354_v63 = vmul.f32 %v1285_v56, %v1003_v58  ;;  %v2138_v2 = vadd.f32 %v2137_v61, %v2136_v55  ;;  %v2027_v3 = vpop.f32.mrf.mxu0  ;;  %v1310_v55 = vpop.permute.xlu1 %1309 }
 0x14f   : > { %v2139_v4 = vpop.f32.mrf.mxu1 }
 0x150   : > { %v1897_v6 = vpack.c.bf16 %v1449_v62, %v1448_v59  ;;  %v1006_v7 = vadd.f32 %v2138_v2, %v2026_v1  ;;  %v1418_v8 = vadd.f32 %v1386_v0, %v1354_v63  ;;  %v2028_v10 = vpop.f32.mrf.mxu0  ;;  %v1391_v59 = vld [vmem:[%s2474_s28 + $0xd8] sm:$0xff] }
 0x151   : > { %v2140_v11 = vpop.f32.mrf.mxu1  ;;  %v2029_v13 = vadd.f32 %v2028_v10, %v2027_v3  ;;  %v1315_v3 = vpop.permute.xlu0 %1314 }
 0x152   : > { %1933 = vst [vmem:[%s2483_s7 + $0x50] sm:$0xff] %v1897_v6   ;;  %v1355_v12 = vmul.f32 %v1290_v5, %v1006_v7  ;;  %v2141_v14 = vadd.f32 %v2140_v11, %v2139_v4  ;;  %v2030_v15 = vpop.f32.mrf.mxu0  ;;  %v1450_v20 = vmax.f32 %v1418_v8, 0.0  ;;  %v1392_v11 = vld [vmem:[%s2474_s28 + $0xe0] sm:$0xff] }
 0x153   : > { %v2142_v16 = vpop.f32.mrf.mxu1 }
 0x154   : > { %v1419_v18 = vadd.f32 %v1387_v9, %v1355_v12  ;;  %v1011_v19 = vadd.f32 %v2141_v14, %v2029_v13  ;;  %v2031_v21 = vpop.f32.mrf.mxu0 }
 0x155   : > { %v2143_v22 = vpop.f32.mrf.mxu1  ;;  %v2032_v26 = vadd.f32 %v2031_v21, %v2030_v15 }
 0x156   : > { %v1451_v23 = vmax.f32 %v1419_v18, 0.0  ;;  %v1356_v24 = vmul.f32 %v1295_v17, %v1011_v19  ;;  %v2144_v27 = vadd.f32 %v2143_v22, %v2142_v16  ;;  %v2033_v28 = vpop.f32.mrf.mxu0  ;;  %v1320_v16 = vpop.permute.xlu1 %1319 }
 0x157   : > { %v2145_v29 = vpop.f32.mrf.mxu1 }
 0x158   : > { %v1902_v31 = vpack.c.bf16 %v1451_v23, %v1450_v20  ;;  %v1014_v32 = vadd.f32 %v2144_v27, %v2032_v26  ;;  %v1420_v33 = vadd.f32 %v1388_v25, %v1356_v24  ;;  %v2034_v35 = vpop.f32.mrf.mxu0  ;;  %v1393_v20 = vld [vmem:[%s2474_s28 + $0xe8] sm:$0xff] }
 0x159   : > { %v2146_v36 = vpop.f32.mrf.mxu1  ;;  %v2035_v38 = vadd.f32 %v2034_v35, %v2033_v28  ;;  %v1325_v28 = vpop.permute.xlu0 %1324 }
 0x15a   : > { %1934 = vst [vmem:[%s2483_s7 + $0x58] sm:$0xff] %v1902_v31   ;;  %v1357_v37 = vmul.f32 %v1300_v30, %v1014_v32  ;;  %v2147_v39 = vadd.f32 %v2146_v36, %v2145_v29  ;;  %v2036_v40 = vpop.f32.mrf.mxu0  ;;  %v1452_v45 = vmax.f32 %v1420_v33, 0.0 }
 0x15b   : > { %v2148_v41 = vpop.f32.mrf.mxu1 }
 0x15c   : > { %v1421_v43 = vadd.f32 %v1389_v34, %v1357_v37  ;;  %v1019_v44 = vadd.f32 %v2147_v39, %v2035_v38  ;;  %v2037_v46 = vpop.f32.mrf.mxu0  ;;  %v1394_v38 = vld [vmem:[%s2474_s28 + $0xf0] sm:$0xff] }
 0x15d   : > { %v2149_v47 = vpop.f32.mrf.mxu1  ;;  %v2038_v51 = vadd.f32 %v2037_v46, %v2036_v40 }
 0x15e   : > { %v1453_v48 = vmax.f32 %v1421_v43, 0.0  ;;  %v1358_v49 = vmul.f32 %v1305_v42, %v1019_v44  ;;  %v2150_v52 = vadd.f32 %v2149_v47, %v2148_v41  ;;  %v2039_v53 = vpop.f32.mrf.mxu0  ;;  %v1330_v41 = vpop.permute.xlu1 %1329  ;;  %v1395_v42 = vld [vmem:[%s2474_s28 + $0xf8] sm:$0xff] }
 0x15f   : > { %v2151_v54 = vpop.f32.mrf.mxu1 }
 0x160   : > { %v1907_v56 = vpack.c.bf16 %v1453_v48, %v1452_v45  ;;  %v1022_v57 = vadd.f32 %v2150_v52, %v2038_v51  ;;  %v1422_v58 = vadd.f32 %v1390_v50, %v1358_v49  ;;  %v2040_v60 = vpop.f32.mrf.mxu0 }
 0x161   : > { %v2152_v61 = vpop.f32.mrf.mxu1  ;;  %v2041_v63 = vadd.f32 %v2040_v60, %v2039_v53 }
 0x162   : > { %1935 = vst [vmem:[%s2483_s7 + $0x60] sm:$0xff] %v1907_v56   ;;  %v1359_v62 = vmul.f32 %v1310_v55, %v1022_v57  ;;  %v2153_v0 = vadd.f32 %v2152_v61, %v2151_v54  ;;  %v2042_v1 = vpop.f32.mrf.mxu0  ;;  %v1454_v6 = vmax.f32 %v1422_v58, 0.0 }
 0x163   : > { %v2154_v2 = vpop.f32.mrf.mxu1 }
 0x164   : > { %v1423_v4 = vadd.f32 %v1391_v59, %v1359_v62  ;;  %v1027_v5 = vadd.f32 %v2153_v0, %v2041_v63  ;;  %v2043_v7 = vpop.f32.mrf.mxu0 }
 0x165   : > { %v2155_v8 = vpop.f32.mrf.mxu1  ;;  %v2044_v12 = vadd.f32 %v2043_v7, %v2042_v1 }
 0x166   : > { %v1455_v9 = vmax.f32 %v1423_v4, 0.0  ;;  %v1360_v10 = vmul.f32 %v1315_v3, %v1027_v5  ;;  %v2156_v13 = vadd.f32 %v2155_v8, %v2154_v2  ;;  %v2045_v14 = vpop.f32.mrf.mxu0 }
 0x167   : > { %v2157_v15 = vpop.f32.mrf.mxu1 }
 0x168   : > { %v1912_v17 = vpack.c.bf16 %v1455_v9, %v1454_v6  ;;  %v1030_v18 = vadd.f32 %v2156_v13, %v2044_v12  ;;  %v1424_v19 = vadd.f32 %v1392_v11, %v1360_v10  ;;  %v2046_v21 = vpop.f32.mrf.mxu0 }
 0x169   : > { %v2158_v22 = vpop.f32.mrf.mxu1  ;;  %v2047_v24 = vadd.f32 %v2046_v21, %v2045_v14 }
 0x16a   : > { %1936 = vst [vmem:[%s2483_s7 + $0x68] sm:$0xff] %v1912_v17   ;;  %v1361_v23 = vmul.f32 %v1320_v16, %v1030_v18  ;;  %v2159_v25 = vadd.f32 %v2158_v22, %v2157_v15  ;;  %v2048_v26 = vpop.f32.mrf.mxu0  ;;  %v1456_v31 = vmax.f32 %v1424_v19, 0.0 }
 0x16b   : > { %v2160_v27 = vpop.f32.mrf.mxu1 }
 0x16c   : > { %v1425_v29 = vadd.f32 %v1393_v20, %v1361_v23  ;;  %v1035_v30 = vadd.f32 %v2159_v25, %v2047_v24  ;;  %v2049_v32 = vpop.f32.mrf.mxu0 }
 0x16d   : > { %v2161_v33 = vpop.f32.mrf.mxu1  ;;  %v2050_v36 = vadd.f32 %v2049_v32, %v2048_v26 }
 0x16e   : > { %v1457_v34 = vmax.f32 %v1425_v29, 0.0  ;;  %v1362_v35 = vmul.f32 %v1325_v28, %v1035_v30  ;;  %v2162_v37 = vadd.f32 %v2161_v33, %v2160_v27 }
 0x170   : > { %v1917_v39 = vpack.c.bf16 %v1457_v34, %v1456_v31  ;;  %v1038_v40 = vadd.f32 %v2162_v37, %v2050_v36  ;;  %v1426_v43 = vadd.f32 %v1394_v38, %v1362_v35 }
 0x172   : > { %1937 = vst [vmem:[%s2483_s7 + $0x70] sm:$0xff] %v1917_v39   ;;  %v1363_v44 = vmul.f32 %v1330_v41, %v1038_v40  ;;  %v1458_v46 = vmax.f32 %v1426_v43, 0.0 }
 0x174   : > { %v1427_v45 = vadd.f32 %v1395_v42, %v1363_v44 }
 0x176   : > { %v1459_v47 = vmax.f32 %v1427_v45, 0.0 }
 0x178   : > { %v1922_v48 = vpack.c.bf16 %v1459_v47, %v1458_v46 }
 0x17a   : > { %1938 = vst [vmem:[%s2483_s7 + $0x78] sm:$0xff] %v1922_v48  }
 0x17b PF: > { %s14_s17 = sadd.s32 1, %s2244_s17   ;;  %s2544_s15 = smov %s2240_s16 }
 0x17c   : > { %p11_p6 = scmp.ge.s32.totalorder %s14_s17, 4   ;;  %s2545_s16 = smov %s2547_s18 }
 0x17e   :  { %13 = sbr.rel (!%p11_p6) target bundleno = 2 (0x2), region = 83 }

</bundles_post_ra>
